<compile_context>
chip_gen: v6e
topology: v6e:2x2x1
jax: 0.10.0
libtpu: 0.0.40
codegen_flags: <defaults>
</compile_context>

<pallas_src>
import math

import jax
import jax.numpy as jnp
from jax.experimental import pallas as pl
from jax.experimental.pallas import tpu as pltpu

# ----------------------------- config -----------------------------------
BATCH = 2
SEQ = 64
DIM = 128                 # EvollaFeedForward `dim`
MULT = 4                  # `mult`
INNER = DIM * MULT        # inner_dim = int(dim * mult) = 512
LN_EPS = 1e-5             # nn.LayerNorm default eps

MXU_DTYPE = jnp.bfloat16  # matmul input dtype (f32 accumulation either way)

_SQRT_2_OVER_PI = 0.7978845608028654
_GELU_C = 0.044715
_INV_SQRT2 = 1.0 / math.sqrt(2.0)


# ----------------------------- helpers ----------------------------------
def _gelu_tanh(x):
    # tanh-approx GELU: tanh lowers to the EUP slot, leaving only a handful of
    # VALU ops per element (vs ~20+ for the erf polynomial).
    # TODO(synk): nn.GELU() default is the exact erf GELU; the tanh approx
    # deviates by up to ~1e-4 in the activation range seen here.
    inner = _SQRT_2_OVER_PI * (x + _GELU_C * x * x * x)
    return 0.5 * x * (1.0 + jnp.tanh(inner))


def _pick_row_tile(rows: int) -> int:
    """Largest row tile that divides `rows` exactly (no pad/slice in HBM).

    <=512 rows: one fat step (full array along the row axis, so the (8,128)
    block constraint does not apply even for odd row counts). Otherwise pick
    an MXU-friendly divisor; if none divides, fall back to one full step.
    """
    if rows <= 512:
        return rows
    for t in (512, 384, 256, 128, 64, 32, 16, 8):
        if rows % t == 0:
            return t
    return rows


# ------------------------------ kernel -----------------------------------
def ff_kernel(x_ref, ln_ref, w1_ref, w2_ref, o_ref):
    # x_ref  : (row_tile, DIM)   f32
    # ln_ref : (2, DIM)          f32   row 0 = gamma, row 1 = beta
    # w1_ref : (DIM, INNER)      bf16  (fc1 weight, transposed vs torch)
    # w2_ref : (INNER, DIM)      bf16  (fc2 weight, transposed vs torch)
    # o_ref  : (row_tile, DIM)   f32
    x = x_ref[...]
    gamma = ln_ref[0:1, :]
    beta = ln_ref[1:2, :]
    inv_d = 1.0 / x.shape[-1]

    # LayerNorm (biased variance, eps=1e-5) in f32.
    # Two lane reductions issued back-to-back; var = E[x^2] - mu^2.
    s1 = jnp.sum(x, axis=-1, keepdims=True)
    s2 = jnp.sum(x * x, axis=-1, keepdims=True)
    mu = s1 * inv_d
    var = jnp.maximum(s2 * inv_d - mu * mu, 0.0)
    xn = (x - mu) * jax.lax.rsqrt(var + LN_EPS) * gamma + beta

    # fc1 (no bias) -> GELU -> fc2 (no bias); bf16 MXU inputs, f32 accumulate.
    h = jnp.dot(xn.astype(MXU_DTYPE), w1_ref[...],
                preferred_element_type=jnp.float32)     # (row_tile, INNER)
    h = _gelu_tanh(h)
    y = jnp.dot(h.astype(MXU_DTYPE), w2_ref[...],
                preferred_element_type=jnp.float32)     # (row_tile, DIM)
    o_ref[...] = y.astype(o_ref.dtype)


# ------------------------------ wrapper -----------------------------------
def evolla_feed_forward(x, ln_gb, w1, w2, row_tile=None):
    """x: (..., DIM) f32; ln_gb: (2, DIM) f32; w1: (DIM, INNER) bf16;
    w2: (INNER, DIM) bf16. Returns f32 with the same shape as x."""
    orig_shape = x.shape
    d = orig_shape[-1]
    rows = math.prod(orig_shape[:-1])
    x2 = x.reshape(rows, d)

    if row_tile is None:
        row_tile = _pick_row_tile(rows)
    n_tiles = pl.cdiv(rows, row_tile)

    out = pl.pallas_call(
        ff_kernel,
        out_shape=jax.ShapeDtypeStruct((rows, d), jnp.float32),
        grid=(n_tiles,),
        in_specs=[
            pl.BlockSpec((row_tile, d), lambda i: (i, 0)),     # x row tile
            pl.BlockSpec(ln_gb.shape, lambda i: (0, 0)),       # gamma/beta
            pl.BlockSpec(w1.shape, lambda i: (0, 0)),          # fc1 weight
            pl.BlockSpec(w2.shape, lambda i: (0, 0)),          # fc2 weight
        ],
        out_specs=pl.BlockSpec((row_tile, d), lambda i: (i, 0)),
        compiler_params=pltpu.CompilerParams(
            dimension_semantics=("parallel",)),
    )(x2, ln_gb, w1, w2)

    return out.reshape(orig_shape)


# --------------------------- pure-JAX reference ---------------------------
def reference(x, gamma, beta, w1, w2):
    # Exact-erf GELU (matches nn.GELU() default) with the same bf16-input /
    # f32-accumulate matmul precision contract as the kernel.
    mu = jnp.mean(x, axis=-1, keepdims=True)
    xc = x - mu
    var = jnp.mean(xc * xc, axis=-1, keepdims=True)
    xn = xc * jax.lax.rsqrt(var + LN_EPS) * gamma + beta
    h = jnp.dot(xn.astype(MXU_DTYPE), w1, preferred_element_type=jnp.float32)
    h = 0.5 * h * (1.0 + jax.scipy.special.erf(h * _INV_SQRT2))
    return jnp.dot(h.astype(MXU_DTYPE), w2, preferred_element_type=jnp.float32)


# --------------------------------- main -----------------------------------
if __name__ == "__main__":
    key = jax.random.PRNGKey(0)
    kx, kg, kb, k1, k2 = jax.random.split(key, 5)

    x = jax.random.normal(kx, (BATCH, SEQ, DIM), jnp.float32)
    gamma = 1.0 + 0.1 * jax.random.normal(kg, (DIM,), jnp.float32)
    beta = 0.1 * jax.random.normal(kb, (DIM,), jnp.float32)
    w1 = (jax.random.normal(k1, (DIM, INNER), jnp.float32) * 0.02
          ).astype(jnp.bfloat16)
    w2 = (jax.random.normal(k2, (INNER, DIM), jnp.float32) * 0.02
          ).astype(jnp.bfloat16)
    ln_gb = jnp.stack([gamma, beta], axis=0)   # (2, DIM)

    out = evolla_feed_forward(x, ln_gb, w1, w2)
    out = jax.block_until_ready(out)
    assert out.shape == (BATCH, SEQ, DIM)

    ref = reference(x.reshape(-1, DIM), gamma, beta, w1, w2
                    ).reshape(BATCH, SEQ, DIM)
    err = float(jnp.max(jnp.abs(out - ref)))
    assert jnp.allclose(out, ref, atol=3e-3, rtol=3e-3), f"max abs err {err}"

    print("KERNEL_OK")
</pallas_src>

<mosaic_0001>
module attributes {stable_mosaic.version = 11 : i64} {
  func.func @ff_kernel(%arg0: i32, %arg1: memref<128x128xf32, #tpu.memory_space<vmem>>, %arg2: memref<2x128xf32, #tpu.memory_space<vmem>>, %arg3: memref<128x512xbf16, #tpu.memory_space<vmem>>, %arg4: memref<512x128xbf16, #tpu.memory_space<vmem>>, %arg5: memref<128x128xf32, #tpu.memory_space<vmem>>) attributes {dimension_semantics = [#tpu.dimension_semantics<parallel>], iteration_bounds = array<i64: 1>, scalar_prefetch = 0 : i64, scratch_operands = 0 : i64, tpu.core_type = #tpu.core_type<tc>, window_params = [{transform_indices = @transform_0, window_bounds = array<i64: 128, 128>}, {pipeline_mode = #tpu.pipeline_mode<synchronous>, transform_indices = @transform_1, window_bounds = array<i64: 2, 128>}, {pipeline_mode = #tpu.pipeline_mode<synchronous>, transform_indices = @transform_2, window_bounds = array<i64: 128, 512>}, {pipeline_mode = #tpu.pipeline_mode<synchronous>, transform_indices = @transform_3, window_bounds = array<i64: 512, 128>}, {transform_indices = @transform_4, window_bounds = array<i64: 128, 128>}]} {
    %c0 = arith.constant 0 : index
    %c0_0 = arith.constant 0 : index
    %0 = vector.load %arg1[%c0, %c0_0] : memref<128x128xf32, #tpu.memory_space<vmem>>, vector<128x128xf32>
    %c0_1 = arith.constant 0 : index
    %c0_2 = arith.constant 0 : index
    %1 = vector.load %arg2[%c0_1, %c0_2] : memref<2x128xf32, #tpu.memory_space<vmem>>, vector<1x128xf32>
    %c1 = arith.constant 1 : index
    %c0_3 = arith.constant 0 : index
    %2 = vector.load %arg2[%c1, %c0_3] : memref<2x128xf32, #tpu.memory_space<vmem>>, vector<1x128xf32>
    %cst = arith.constant dense<0.000000e+00> : vector<128xf32>
    %3 = vector.multi_reduction <add>, %0, %cst [1] : vector<128x128xf32> to vector<128xf32>
    %4 = vector.shape_cast %3 : vector<128xf32> to vector<128x1xf32>
    %5 = arith.mulf %0, %0 : vector<128x128xf32>
    %cst_4 = arith.constant dense<0.000000e+00> : vector<128xf32>
    %6 = vector.multi_reduction <add>, %5, %cst_4 [1] : vector<128x128xf32> to vector<128xf32>
    %7 = vector.shape_cast %6 : vector<128xf32> to vector<128x1xf32>
    %cst_5 = arith.constant 7.812500e-03 : f32
    %8 = vector.broadcast %cst_5 : f32 to vector<128x1xf32>
    %9 = arith.mulf %4, %8 : vector<128x1xf32>
    %cst_6 = arith.constant 7.812500e-03 : f32
    %10 = vector.broadcast %cst_6 : f32 to vector<128x1xf32>
    %11 = arith.mulf %7, %10 : vector<128x1xf32>
    %12 = arith.mulf %9, %9 : vector<128x1xf32>
    %13 = arith.subf %11, %12 : vector<128x1xf32>
    %cst_7 = arith.constant 0.000000e+00 : f32
    %14 = vector.broadcast %cst_7 : f32 to vector<128x1xf32>
    %15 = arith.maximumf %13, %14 : vector<128x1xf32>
    %16 = vector.broadcast %9 : vector<128x1xf32> to vector<128x128xf32>
    %17 = arith.subf %0, %16 : vector<128x128xf32>
    %cst_8 = arith.constant 9.99999974E-6 : f32
    %18 = vector.broadcast %cst_8 : f32 to vector<128x1xf32>
    %19 = arith.addf %15, %18 : vector<128x1xf32>
    %20 = math.rsqrt %19 : vector<128x1xf32>
    %21 = vector.broadcast %20 : vector<128x1xf32> to vector<128x128xf32>
    %22 = arith.mulf %17, %21 : vector<128x128xf32>
    %23 = vector.broadcast %1 : vector<1x128xf32> to vector<128x128xf32>
    %24 = arith.mulf %22, %23 : vector<128x128xf32>
    %25 = vector.broadcast %2 : vector<1x128xf32> to vector<128x128xf32>
    %26 = arith.addf %24, %25 : vector<128x128xf32>
    %27 = arith.truncf %26 : vector<128x128xf32> to vector<128x128xbf16>
    %c0_9 = arith.constant 0 : index
    %c0_10 = arith.constant 0 : index
    %28 = vector.load %arg3[%c0_9, %c0_10] : memref<128x512xbf16, #tpu.memory_space<vmem>>, vector<128x512xbf16>
    %cst_11 = arith.constant dense<0.000000e+00> : vector<128x512xf32>
    %29 = tpu.matmul %27, %28, %cst_11 {dimension_numbers = #tpu.dot_dimension_numbers<[1], [0], [0], [1], [0, 0, 1, 1], [], []>} : vector<128x128xbf16>, vector<128x512xbf16>, vector<128x512xf32> -> vector<128x512xf32>
    %cst_12 = arith.constant 4.471500e-02 : f32
    %30 = vector.broadcast %cst_12 : f32 to vector<128x512xf32>
    %31 = arith.mulf %30, %29 : vector<128x512xf32>
    %32 = arith.mulf %31, %29 : vector<128x512xf32>
    %33 = arith.mulf %32, %29 : vector<128x512xf32>
    %34 = arith.addf %29, %33 : vector<128x512xf32>
    %cst_13 = arith.constant 0.797884583 : f32
    %35 = vector.broadcast %cst_13 : f32 to vector<128x512xf32>
    %36 = arith.mulf %35, %34 : vector<128x512xf32>
    %cst_14 = arith.constant 5.000000e-01 : f32
    %37 = vector.broadcast %cst_14 : f32 to vector<128x512xf32>
    %38 = arith.mulf %37, %29 : vector<128x512xf32>
    %39 = math.tanh %36 : vector<128x512xf32>
    %cst_15 = arith.constant 1.000000e+00 : f32
    %40 = vector.broadcast %cst_15 : f32 to vector<128x512xf32>
    %41 = arith.addf %40, %39 : vector<128x512xf32>
    %42 = arith.mulf %38, %41 : vector<128x512xf32>
    %43 = arith.truncf %42 : vector<128x512xf32> to vector<128x512xbf16>
    %c0_16 = arith.constant 0 : index
    %c0_17 = arith.constant 0 : index
    %44 = vector.load %arg4[%c0_16, %c0_17] : memref<512x128xbf16, #tpu.memory_space<vmem>>, vector<512x128xbf16>
    %cst_18 = arith.constant dense<0.000000e+00> : vector<128x128xf32>
    %45 = tpu.matmul %43, %44, %cst_18 {dimension_numbers = #tpu.dot_dimension_numbers<[1], [0], [0], [1], [0, 0, 1, 1], [], []>} : vector<128x512xbf16>, vector<512x128xbf16>, vector<128x128xf32> -> vector<128x128xf32>
    %c0_19 = arith.constant 0 : index
    %c0_20 = arith.constant 0 : index
    %46 = vector.load %arg5[%c0_19, %c0_20] : memref<128x128xf32, #tpu.memory_space<vmem>>, vector<128x128xf32>
    tpu.vector_store %arg5[%c0_19, %c0_20], %45 {strides = array<i32>} : memref<128x128xf32, #tpu.memory_space<vmem>>, vector<128x128xf32>,
    return
  }
  func.func @transform_0(%arg0: i32) -> (i32, i32) {
    %c0_i32 = arith.constant 0 : i32
    %c0_i32_0 = arith.constant 0 : i32
    return %arg0, %c0_i32 : i32, i32
  }
  func.func @transform_1(%arg0: i32) -> (i32, i32) {
    %c0_i32 = arith.constant 0 : i32
    %c0_i32_0 = arith.constant 0 : i32
    %c0_i32_1 = arith.constant 0 : i32
    return %c0_i32, %c0_i32_0 : i32, i32
  }
  func.func @transform_2(%arg0: i32) -> (i32, i32) {
    %c0_i32 = arith.constant 0 : i32
    %c0_i32_0 = arith.constant 0 : i32
    %c0_i32_1 = arith.constant 0 : i32
    return %c0_i32, %c0_i32_0 : i32, i32
  }
  func.func @transform_3(%arg0: i32) -> (i32, i32) {
    %c0_i32 = arith.constant 0 : i32
    %c0_i32_0 = arith.constant 0 : i32
    %c0_i32_1 = arith.constant 0 : i32
    return %c0_i32, %c0_i32_0 : i32, i32
  }
  func.func @transform_4(%arg0: i32) -> (i32, i32) {
    %c0_i32 = arith.constant 0 : i32
    %c0_i32_0 = arith.constant 0 : i32
    return %arg0, %c0_i32 : i32, i32
  }
}

</mosaic_0001>

<bundles_post_ra>
// kernel: tpu_custom_call.1
= control target key start
LH: loop header
LB: loop body
LE: loop exit
PB: predicated region body
PF: predicated region fallthrough
CT: control target
= control target key end

     0   :  { %9 = vsyncpa [#allocation3], 0  ;;  %s3313_s0 = inlined_call_operand.hbm [shape: f32[128,128], index: 0, kind: input, shape index: {}]   ;;  %s3314_s1 = inlined_call_operand.hbm [shape: f32[2,128], index: 1, kind: input, shape index: {}]   ;;  %s3315_s2 = inlined_call_operand.hbm [shape: bf16[128,512], index: 2, kind: input, shape index: {}]   ;;  %s3316_s3 = inlined_call_operand.hbm [shape: bf16[512,128], index: 3, kind: input, shape index: {}]   ;;  %s3317_s4 = inlined_call_operand.hbm [shape: f32[128,128], index: 4, kind: output, shape index: {}]  }
   0x1   :  { %10 = vsyncpa [#allocation6], 0 }
   0x2   :  { %11 = vsyncpa [#allocation9], 0 }
   0x3   :  { %12 = vsyncpa [#allocation4], 0  ;;  %s2427_s15 = smov [#allocation5]   ;;  %s2428_s17 = smov [#allocation2]  }
   0x4   :  { %s31_s16 = sshll.u32 %s2427_s15, 4  ;;  %s18_s18 = sshll.u32 %s2428_s17, 4  ;;  %s32_s16 = int_to_ptr.vmem [resolvable:$true] %s31_s16  ;;  %s19_s18 = int_to_ptr.vmem [resolvable:$true] %s18_s18 }
   0x5   :  { %s2327_s19 = scalar_lea.vmem %s32_s16, 32  ;;  %p2332_p1 = scmp.lt.s32.totalorder %s32_s16, %s32_s16 }
   0x6   :  { %p2328_p0 = scmp.ne.s32.totalorder %s32_s16, %s2327_s19  ;;  %p2333_p2 = scmp.lt.s32.totalorder %s2327_s19, %s2327_s19 }
   0x8   :  { %p2334_p3 = por %p2333_p2, %p2332_p1 }
   0xa   :  { %p2335_p4 = pnand %p2334_p3, %p2328_p0 }
   0xc   :  { %2338 = shalt.err (!%p2335_p4)
}
   0xd   :  { %34 = dma.hbm_to_vmem [thread:$0]  %s3314_s1, 32, %s32_s16, [#allocation6]  }
   0xe   :  { %s2347_s22 = scalar_lea.vmem %s19_s18, 2048  ;;  %p2352_p6 = scmp.lt.s32.totalorder %s19_s18, %s19_s18 }
   0xf   :  { %p2348_p5 = scmp.ne.s32.totalorder %s19_s18, %s2347_s22  ;;  %p2353_p7 = scmp.lt.s32.totalorder %s2347_s22, %s2347_s22 }
  0x11   :  { %p2354_p8 = por %p2353_p7, %p2352_p6 }
  0x13   :  { %p2355_p9 = pnand %p2354_p8, %p2348_p5 }
  0x15   :  { %2358 = shalt.err (!%p2355_p9)
}
  0x16   :  { %s2429_s23 = smov 128   ;;  %s2430_s24 = smov 8  }
  0x17   :  { %24 = dma.hbm_to_vmem [thread:$0]  %s3313_s0, 2048, %s19_s18, [#allocation3], %s2429_s23, %s2429_s23, %s2430_s24  }
  0x18   :  { %s2431_s27 = smov [#allocation7]  }
  0x19   :  { %s40_s28 = sshll.u32 %s2431_s27, 4  ;;  %s41_s28 = int_to_ptr.vmem [resolvable:$true] %s40_s28 }
  0x1a   :  { %s2367_s1 = scalar_lea.vmem %s41_s28, 4096  ;;  %p2372_p11 = scmp.lt.s32.totalorder %s41_s28, %s41_s28 }
  0x1b   :  { %p2368_p10 = scmp.ne.s32.totalorder %s41_s28, %s2367_s1  ;;  %p2373_p12 = scmp.lt.s32.totalorder %s2367_s1, %s2367_s1 }
  0x1d   :  { %p2374_p13 = por %p2373_p12, %p2372_p11 }
  0x1f   :  { %p2375_p0 = pnand %p2374_p13, %p2368_p10 }
  0x21   :  { %2378 = shalt.err (!%p2375_p0)
}
  0x22   :  { %s2432_s29 = smov 256   ;;  %s2433_s30 = smov 16  }
  0x23   :  { %46 = dma.hbm_to_vmem [thread:$0]  %s3315_s2, 4096, %s41_s28, [#allocation6], %s2432_s29, %s2432_s29, %s2433_s30  }
  0x24   :  { %s2434_s7 = smov [#allocation8]  }
  0x25   :  { %s52_s8 = sshll.u32 %s2434_s7, 4  ;;  %s53_s8 = int_to_ptr.vmem [resolvable:$true] %s52_s8 }
  0x26   :  { %s2387_s0 = scalar_lea.vmem %s53_s8, 4096  ;;  %p2392_p2 = scmp.lt.s32.totalorder %s53_s8, %s53_s8 }
  0x27   :  { %p2388_p1 = scmp.ne.s32.totalorder %s53_s8, %s2387_s0  ;;  %p2393_p3 = scmp.lt.s32.totalorder %s2387_s0, %s2387_s0 }
  0x29   :  { %p2394_p4 = por %p2393_p3, %p2392_p2 }
  0x2b   :  { %p2395_p5 = pnand %p2394_p4, %p2388_p1 }
  0x2d   :  { %2398 = shalt.err (!%p2395_p5)
}
  0x2e   :  { %s2435_s9 = smov 64   ;;  %s2436_s10 = smov 4  }
  0x2f   :  { %58 = dma.hbm_to_vmem [thread:$0]  %s3316_s3, 4096, %s53_s8, [#allocation9], %s2435_s9, %s2435_s9, %s2436_s10  }
  0x30   :  { %2419 = dma.done.wait [#allocation3], 2048  }
  0x31   :  { %2420 = vsyncadd [#allocation3], 4294965248 }
  0x32   :  { %2421 = dma.done.wait [#allocation6], 4128  }
  0x33   :  { %2422 = vsyncadd [#allocation6], 4294963168 }
  0x34   :  { %2423 = dma.done.wait [#allocation9], 4096  }
  0x35   :  { %2424 = vsyncadd [#allocation9], 4294963200  ;;  %v2479_v0 = vld [vmem:[#allocation2] sm:$0xff]  ;;  %v2481_v1 = vld [vmem:[#allocation2 + $0x8] sm:$0xff]  ;;  %v2437_v58 = vmov 0   ;;  %s2438_s2 = smov [#allocation10]  }
  0x36   :  { %90 = vadd.xlane.f32.xlu0 %v2479_v0  ;;  %v122_v2 = vmul.f32 %v2479_v0, %v2479_v0  ;;  %v123_v3 = vmul.f32 %v2481_v1, %v2481_v1  ;;  %v2489_v4 = vld [vmem:[#allocation2 + $0x10] sm:$0xff]  ;;  %v2491_v5 = vld [vmem:[#allocation2 + $0x18] sm:$0xff]  ;;  %v2499_v8 = vld [vmem:[#allocation2 + $0x20] sm:$0xff]  ;;  %586 = vmatprep.mubr.bf16.mxu0 %v2437_v58  ;;  %s1859_s3 = sshll.u32 %s2438_s2, 4  ;;  %s1860_s3 = int_to_ptr.vmem [resolvable:$true] %s1859_s3 }
  0x37   :  { %v124_v6 = vmul.f32 %v2489_v4, %v2489_v4  ;;  %v125_v7 = vmul.f32 %v2491_v5, %v2491_v5  ;;  %v2079_v9 = vld [vmem:[#allocation7 + $0xe4] ss:$16 sps:$4 sm:$0xff]   ;;  %v2081_v10 = vld [vmem:[#allocation7 + $0xec] ss:$16 sps:$4 sm:$0xff]   ;;  %v2083_v12 = vld [vmem:[#allocation7 + $0xe0] ss:$16 sps:$4 sm:$0xff]   ;;  %v126_v14 = vmul.f32 %v2499_v8, %v2499_v8  ;;  %699 = vmatprep.mubr.bf16.mxu1 %v2437_v58  ;;  %p2404_p7 = scmp.lt.s32.totalorder %s1860_s3, %s1860_s3 }
  0x38   :  { %138 = vadd.xlane.f32.xlu1 %v122_v2  ;;  %v2501_v11 = vld [vmem:[#allocation2 + $0x28] sm:$0xff]  ;;  %554 = vmatprep.subr.bf16.mxu0 %v2079_v9  ;;  %v2089_v17 = vld [vmem:[#allocation7 + $0xc0] ss:$16 sps:$4 sm:$0xff]   ;;  %v2511_v21 = vld [vmem:[#allocation2 + $0x38] sm:$0xff]  ;;  %s2399_s13 = scalar_lea.vmem %s1860_s3, 2048 }
  0x39   :  { %v2084_v13 = vld [vmem:[#allocation7 + $0xe8] ss:$16 sps:$4 sm:$0xff]   ;;  %667 = vmatprep.subr.bf16.mxu1 %v2081_v10  ;;  %555 = vmatpush1.bf16.msra.mxu0 %v2083_v12  ;;  %v2085_v15 = vld [vmem:[#allocation7 + $0xc4] ss:$16 sps:$4 sm:$0xff]   ;;  %v2087_v16 = vld [vmem:[#allocation7 + $0xcc] ss:$16 sps:$4 sm:$0xff]   ;;  %v127_v19 = vmul.f32 %v2501_v11, %v2501_v11  ;;  %v129_v29 = vmul.f32 %v2511_v21, %v2511_v21  ;;  %p2400_p6 = scmp.ne.s32.totalorder %s1860_s3, %s2399_s13  ;;  %p2405_p8 = scmp.lt.s32.totalorder %s2399_s13, %s2399_s13 }
  0x3a   :  { %92 = vadd.xlane.f32.xlu0 %v2481_v1  ;;  %668 = vmatpush1.bf16.msra.mxu1 %v2084_v13  ;;  %v2090_v18 = vld [vmem:[#allocation7 + $0xc8] ss:$16 sps:$4 sm:$0xff]   ;;  %v2509_v20 = vld [vmem:[#allocation2 + $0x30] sm:$0xff]  ;;  %v2519_v32 = vld [vmem:[#allocation2 + $0x40] sm:$0xff] }
  0x3b   :  { %556 = vmatprep.subr.bf16.mxu0 %v2085_v15  ;;  %669 = vmatprep.subr.bf16.mxu1 %v2087_v16  ;;  %v2091_v22 = vld [vmem:[#allocation7 + $0xa4] ss:$16 sps:$4 sm:$0xff]   ;;  %v2093_v23 = vld [vmem:[#allocation7 + $0xac] ss:$16 sps:$4 sm:$0xff]   ;;  %v2095_v24 = vld [vmem:[#allocation7 + $0xa0] ss:$16 sps:$4 sm:$0xff]   ;;  %v128_v26 = vmul.f32 %v2509_v20, %v2509_v20  ;;  %v130_v38 = vmul.f32 %v2519_v32, %v2519_v32  ;;  %p2406_p9 = por %p2405_p8, %p2404_p7 }
  0x3c   :  { %140 = vadd.xlane.f32.xlu1 %v123_v3  ;;  %v2096_v25 = vld [vmem:[#allocation7 + $0xa8] ss:$16 sps:$4 sm:$0xff]   ;;  %v2097_v27 = vld [vmem:[#allocation7 + $0x84] ss:$16 sps:$4 sm:$0xff]   ;;  %v2099_v28 = vld [vmem:[#allocation7 + $0x8c] ss:$16 sps:$4 sm:$0xff]  }
  0x3d   :  { %557 = vmatpush1.bf16.msra.mxu0 %v2089_v17  ;;  %v2101_v30 = vld [vmem:[#allocation7 + $0x80] ss:$16 sps:$4 sm:$0xff]   ;;  %v2102_v31 = vld [vmem:[#allocation7 + $0x88] ss:$16 sps:$4 sm:$0xff]   ;;  %v2103_v34 = vld [vmem:[#allocation7 + $0x64] ss:$16 sps:$4 sm:$0xff]   ;;  %p2407_p10 = pnand %p2406_p9, %p2400_p6 }
  0x3e   :  { %94 = vadd.xlane.f32.xlu0 %v2489_v4  ;;  %670 = vmatpush1.bf16.msra.mxu1 %v2090_v18  ;;  %v2521_v33 = vld [vmem:[#allocation2 + $0x48] sm:$0xff]  ;;  %v2107_v36 = vld [vmem:[#allocation7 + $0x60] ss:$16 sps:$4 sm:$0xff]   ;;  %v2531_v47 = vld [vmem:[#allocation2 + $0x58] sm:$0xff] }
  0x3f   :  { %558 = vmatprep.subr.bf16.mxu0 %v2091_v22  ;;  %671 = vmatprep.subr.bf16.mxu1 %v2093_v23  ;;  %v2105_v35 = vld [vmem:[#allocation7 + $0x6c] ss:$16 sps:$4 sm:$0xff]   ;;  %v2108_v37 = vld [vmem:[#allocation7 + $0x68] ss:$16 sps:$4 sm:$0xff]   ;;  %v2109_v39 = vld [vmem:[#allocation7 + $0x44] ss:$16 sps:$4 sm:$0xff]   ;;  %v131_v41 = vmul.f32 %v2521_v33, %v2521_v33  ;;  %v133_v53 = vmul.f32 %v2531_v47, %v2531_v47 }
  0x40   :  { %96 = vadd.xlane.f32.xlu1 %v2491_v5  ;;  %v2111_v40 = vld [vmem:[#allocation7 + $0x4c] ss:$16 sps:$4 sm:$0xff]   ;;  %v2113_v42 = vld [vmem:[#allocation7 + $0x40] ss:$16 sps:$4 sm:$0xff]   ;;  %v2114_v43 = vld [vmem:[#allocation7 + $0x48] ss:$16 sps:$4 sm:$0xff]  }
  0x41   :  { %559 = vmatpush1.bf16.msra.mxu0 %v2095_v24  ;;  %v2529_v44 = vld [vmem:[#allocation2 + $0x50] sm:$0xff]  ;;  %v2120_v49 = vld [vmem:[#allocation7 + $0x28] ss:$16 sps:$4 sm:$0xff]   ;;  %v2539_v56 = vld [vmem:[#allocation2 + $0x60] sm:$0xff] }
  0x42   :  { %142 = vadd.xlane.f32.xlu0 %v124_v6  ;;  %672 = vmatpush1.bf16.msra.mxu1 %v2096_v25  ;;  %v2115_v45 = vld [vmem:[#allocation7 + $0x24] ss:$16 sps:$4 sm:$0xff]   ;;  %v2117_v46 = vld [vmem:[#allocation7 + $0x2c] ss:$16 sps:$4 sm:$0xff]   ;;  %v2119_v48 = vld [vmem:[#allocation7 + $0x20] ss:$16 sps:$4 sm:$0xff]   ;;  %v132_v50 = vmul.f32 %v2529_v44, %v2529_v44  ;;  %v134_v59 = vmul.f32 %v2539_v56, %v2539_v56 }
  0x43   :  { %560 = vmatprep.subr.bf16.mxu0 %v2097_v27  ;;  %673 = vmatprep.subr.bf16.mxu1 %v2099_v28  ;;  %v2121_v51 = vld [vmem:[#allocation7 + $0x4] ss:$16 sps:$4 sm:$0xff]   ;;  %v2123_v52 = vld [vmem:[#allocation7 + $0xc] ss:$16 sps:$4 sm:$0xff]   ;;  %v2125_v54 = vld [vmem:[#allocation7] ss:$16 sps:$4 sm:$0xff]  }
  0x44   :  { %144 = vadd.xlane.f32.xlu1 %v125_v7  ;;  %v2126_v55 = vld [vmem:[#allocation7 + $0x8] ss:$16 sps:$4 sm:$0xff]   ;;  %v2551_v61 = vld [vmem:[#allocation2 + $0x70] sm:$0xff] }
  0x45   :  { %561 = vmatpush1.bf16.msra.mxu0 %v2101_v30  ;;  %v2541_v57 = vld [vmem:[#allocation2 + $0x68] sm:$0xff]  ;;  %v2553_v62 = vld [vmem:[#allocation2 + $0x78] sm:$0xff]  ;;  %v136_v63 = vmul.f32 %v2551_v61, %v2551_v61 }
  0x46   :  { %98 = vadd.xlane.f32.xlu0 %v2499_v8  ;;  %674 = vmatpush1.bf16.msra.mxu1 %v2102_v31  ;;  %v135_v60 = vmul.f32 %v2541_v57, %v2541_v57  ;;  %v137_v2 = vmul.f32 %v2553_v62, %v2553_v62  ;;  %v2127_v3 = vld [vmem:[#allocation8 + $0x78] sm:$0xff]  }
  0x47   :  { %562 = vmatprep.subr.bf16.mxu0 %v2103_v34  ;;  %675 = vmatprep.subr.bf16.mxu1 %v2105_v35  ;;  %v2128_v6 = vld [vmem:[#allocation8 + $0xf8] sm:$0xff]  }
  0x48   :  { %100 = vadd.xlane.f32.xlu1 %v2501_v11 }
  0x49   :  { %563 = vmatpush1.bf16.msra.mxu0 %v2107_v36 }
  0x4a   :  { %146 = vadd.xlane.f32.xlu0 %v126_v14  ;;  %676 = vmatpush1.bf16.msra.mxu1 %v2108_v37 }
  0x4b   :  { %564 = vmatprep.subr.bf16.mxu0 %v2109_v39  ;;  %677 = vmatprep.subr.bf16.mxu1 %v2111_v40 }
  0x4c   :  { %148 = vadd.xlane.f32.xlu1 %v127_v19 }
  0x4d   :  { %565 = vmatpush1.bf16.msra.mxu0 %v2113_v42 }
  0x4e   :  { %102 = vadd.xlane.f32.xlu0 %v2509_v20  ;;  %678 = vmatpush1.bf16.msra.mxu1 %v2114_v43 }
  0x4f   :  { %566 = vmatprep.subr.bf16.mxu0 %v2115_v45  ;;  %679 = vmatprep.subr.bf16.mxu1 %v2117_v46 }
  0x50   :  { %104 = vadd.xlane.f32.xlu1 %v2511_v21 }
  0x51   :  { %567 = vmatpush1.bf16.msra.mxu0 %v2119_v48 }
  0x52   :  { %150 = vadd.xlane.f32.xlu0 %v128_v26  ;;  %680 = vmatpush1.bf16.msra.mxu1 %v2120_v49 }
  0x53   :  { %568 = vmatprep.subr.bf16.mxu0 %v2121_v51  ;;  %681 = vmatprep.subr.bf16.mxu1 %v2123_v52 }
  0x54   :  { %152 = vadd.xlane.f32.xlu1 %v129_v29 }
  0x55   :  { %569 = vmatpush1.bf16.msra.mxu0 %v2125_v54 }
  0x56   :  { %106 = vadd.xlane.f32.xlu0 %v2519_v32  ;;  %682 = vmatpush1.bf16.msra.mxu1 %v2126_v55 }
  0x57   :  { %1939 = vmatprep.subr.bf16.mxu0 %v2127_v3  ;;  %2003 = vmatprep.subr.bf16.mxu1 %v2128_v6 }
  0x58   :  { %108 = vadd.xlane.f32.xlu1 %v2521_v33 }
  0x5a   :  { %154 = vadd.xlane.f32.xlu0 %v130_v38 }
  0x5c   :  { %156 = vadd.xlane.f32.xlu1 %v131_v41 }
  0x5e   :  { %110 = vadd.xlane.f32.xlu0 %v2529_v44 }
  0x60   :  { %112 = vadd.xlane.f32.xlu1 %v2531_v47 }
  0x62   :  { %158 = vadd.xlane.f32.xlu0 %v132_v50 }
  0x64   :  { %160 = vadd.xlane.f32.xlu1 %v133_v53 }
  0x66   :  { %114 = vadd.xlane.f32.xlu0 %v2539_v56 }
  0x68   :  { %116 = vadd.xlane.f32.xlu1 %v2541_v57 }
  0x6a   :  { %162 = vadd.xlane.f32.xlu0 %v134_v59 }
  0x6c   :  { %164 = vadd.xlane.f32.xlu1 %v135_v60 }
  0x6e   :  { %118 = vadd.xlane.f32.xlu0 %v2551_v61 }
  0x70   :  { %120 = vadd.xlane.f32.xlu1 %v2553_v62 }
  0x72   :  { %166 = vadd.xlane.f32.xlu0 %v136_v63 }
  0x74   :  { %168 = vadd.xlane.f32.xlu1 %v137_v2 }
  0xbf   :  { %v91_v7 = vpop.xlane.xlu0 %90 }
  0xc0   :  { %v170_v9 = vmul.f32 0.0078125, %v91_v7 }
  0xc1   :  { %v139_v10 = vpop.xlane.xlu1 %138 }
  0xc2   :  { %v202_v12 = vmul.f32 %v170_v9, %v170_v9  ;;  %v186_v13 = vmul.f32 0.0078125, %v139_v10  ;;  %v250_v2 = vsub.f32 %v2479_v0, %v170_v9 }
  0xc3   :  { %v93_v14 = vpop.xlane.xlu0 %92 }
  0xc4   :  { %v218_v15 = vsub.f32 %v186_v13, %v202_v12  ;;  %v171_v16 = vmul.f32 0.0078125, %v93_v14 }
  0xc5   :  { %v141_v17 = vpop.xlane.xlu1 %140 }
  0xc6   :  { %v234_v18 = vmax.f32 %v218_v15, 0.0  ;;  %v203_v19 = vmul.f32 %v171_v16, %v171_v16  ;;  %v187_v22 = vmul.f32 0.0078125, %v141_v17  ;;  %v251_v14 = vsub.f32 %v2481_v1, %v171_v16 }
  0xc7   :  { %v95_v23 = vpop.xlane.xlu0 %94 }
  0xc8   :  { %v266_v24 = vadd.f32 1e-05, %v234_v18  ;;  %v219_v25 = vsub.f32 %v187_v22, %v203_v19  ;;  %v2561_v26 = vmul.f32 0.0078125, %v95_v23  ;;  %v2583_v19 = vld [vmem:[#allocation5] ss:$0 sm:$0xff] }
  0xc9   :  { %v97_v27 = vpop.xlane.xlu1 %96 }
  0xca   :  { %2159 = vrsqrt.f32 %v266_v24  ;;  %v235_v28 = vmax.f32 %v219_v25, 0.0  ;;  %v204_v29 = vmul.f32 %v2561_v26, %v2561_v26  ;;  %v2565_v30 = vmul.f32 0.0078125, %v97_v27 }
  0xcb   :  { %v143_v31 = vpop.xlane.xlu0 %142 }
  0xcc   :  { %v267_v34 = vadd.f32 1e-05, %v235_v28  ;;  %v188_v35 = vmul.f32 0.0078125, %v143_v31  ;;  %v205_v37 = vmul.f32 %v2565_v30, %v2565_v30  ;;  %v2590_v31 = vld [vmem:[#allocation5 + $0x1] ss:$0 sm:$0xff] }
  0xcd   :  { %v145_v36 = vpop.xlane.xlu1 %144 }
  0xce   :  { %2161 = vrsqrt.f32 %v267_v34  ;;  %v220_v38 = vsub.f32 %v188_v35, %v204_v29  ;;  %v189_v39 = vmul.f32 0.0078125, %v145_v36 }
  0xcf   :  { %v99_v40 = vpop.xlane.xlu0 %98 }
  0xd0   :  { %v236_v41 = vmax.f32 %v220_v38, 0.0  ;;  %v221_v42 = vsub.f32 %v189_v39, %v205_v37  ;;  %v2569_v43 = vmul.f32 0.0078125, %v99_v40 }
  0xd1   :  { %v101_v45 = vpop.xlane.xlu1 %100 }
  0xd2   :  { %v268_v46 = vadd.f32 1e-05, %v236_v41  ;;  %v237_v48 = vmax.f32 %v221_v42, 0.0  ;;  %v206_v49 = vmul.f32 %v2569_v43, %v2569_v43  ;;  %v2573_v50 = vmul.f32 0.0078125, %v101_v45 }
  0xd3   :  { %v147_v51 = vpop.xlane.xlu0 %146  ;;  %v252_v41 = vsub.f32 %v2489_v4, %v2561_v26 }
  0xd4   :  { %2163 = vrsqrt.f32 %v268_v46  ;;  %v269_v52 = vadd.f32 1e-05, %v237_v48  ;;  %v190_v53 = vmul.f32 0.0078125, %v147_v51  ;;  %v207_v55 = vmul.f32 %v2573_v50, %v2573_v50 }
  0xd5   :  { %v149_v54 = vpop.xlane.xlu1 %148  ;;  %v253_v46 = vsub.f32 %v2491_v5, %v2565_v30 }
  0xd6   :  { %2165 = vrsqrt.f32 %v269_v52  ;;  %v222_v59 = vsub.f32 %v190_v53, %v206_v49  ;;  %v191_v60 = vmul.f32 0.0078125, %v149_v54 }
  0xd7   :  { %v2160_v63 = vpop.eup %2159  ;;  %v103_v3 = vpop.xlane.xlu0 %102 }
  0xd8   :  { %v238_v6 = vmax.f32 %v222_v59, 0.0  ;;  %v223_v7 = vsub.f32 %v191_v60, %v207_v55  ;;  %v2578_v10 = vmul.f32 0.0078125, %v103_v3  ;;  %v298_v13 = vmul.f32 %v2160_v63, %v250_v2  ;;  %v2129_v60 = vld [vmem:[#allocation8 + $0x38] sm:$0xff]   ;;  %v2131_v3 = vld [vmem:[#allocation8 + $0x70] sm:$0xff]  }
  0xd9   :  { %v105_v12 = vpop.xlane.xlu1 %104  ;;  %v2130_v63 = vld [vmem:[#allocation8 + $0xb8] sm:$0xff]  }
  0xda   :  { %v270_v15 = vadd.f32 1e-05, %v238_v6  ;;  %v239_v17 = vmax.f32 %v223_v7, 0.0  ;;  %v208_v18 = vmul.f32 %v2578_v10, %v2578_v10  ;;  %v2585_v23 = vmul.f32 0.0078125, %v105_v12  ;;  %v2132_v6 = vld [vmem:[#allocation8 + $0xf0] sm:$0xff]  }
  0xdb   :  { %v2162_v22 = vpop.eup %2161  ;;  %v151_v0 = vpop.xlane.xlu0 %150  ;;  %v318_v1 = vmul.f32 %v2583_v19, %v298_v13 }
  0xdc   :  { %2167 = vrsqrt.f32 %v270_v15  ;;  %v271_v9 = vadd.f32 1e-05, %v239_v17  ;;  %v192_v24 = vmul.f32 0.0078125, %v151_v0  ;;  %v299_v25 = vmul.f32 %v2162_v22, %v251_v14  ;;  %v2133_v17 = vld [vmem:[#allocation8 + $0x30] sm:$0xff]  }
  0xdd   :  { %v209_v27 = vmul.f32 %v2585_v23, %v2585_v23  ;;  %v153_v28 = vpop.xlane.xlu1 %152  ;;  %v338_v45 = vadd.f32 %v2590_v31, %v318_v1  ;;  %v254_v1 = vsub.f32 %v2499_v8, %v2569_v43  ;;  %v2137_v8 = vld [vmem:[#allocation8 + $0x28] sm:$0xff]  }
  0xde   :  { %2169 = vrsqrt.f32 %v271_v9  ;;  %v224_v16 = vsub.f32 %v192_v24, %v208_v18  ;;  %v193_v29 = vmul.f32 0.0078125, %v153_v28  ;;  %v319_v34 = vmul.f32 %v2583_v19, %v299_v25  ;;  %v2134_v18 = vld [vmem:[#allocation8 + $0xb0] sm:$0xff]   ;;  %v2135_v25 = vld [vmem:[#allocation8 + $0x68] sm:$0xff]  }
  0xdf   :  { %v107_v35 = vpop.xlane.xlu0 %106  ;;  %v2138_v43 = vld [vmem:[#allocation8 + $0xa8] sm:$0xff]  }
  0xe0   :  { %v240_v36 = vmax.f32 %v224_v16, 0.0  ;;  %v225_v37 = vsub.f32 %v193_v29, %v209_v27  ;;  %v2593_v38 = vmul.f32 0.0078125, %v107_v35  ;;  %v339_v39 = vadd.f32 %v2590_v31, %v319_v34  ;;  %v2136_v27 = vld [vmem:[#allocation8 + $0xe8] sm:$0xff]  }
  0xe1   :  { %v2164_v40 = vpop.eup %2163  ;;  %v109_v42 = vpop.xlane.xlu1 %108  ;;  %v255_v34 = vsub.f32 %v2501_v11, %v2573_v50  ;;  %v2139_v11 = vld [vmem:[#allocation8 + $0x60] sm:$0xff]  }
  0xe2   :  { %v272_v48 = vadd.f32 1e-05, %v240_v36  ;;  %v241_v49 = vmax.f32 %v225_v37, 0.0  ;;  %v210_v51 = vmul.f32 %v2593_v38, %v2593_v38  ;;  %v2603_v53 = vmul.f32 0.0078125, %v109_v42  ;;  %v2140_v50 = vld [vmem:[#allocation8 + $0xe0] sm:$0xff]  }
  0xe3   :  { %v2166_v52 = vpop.eup %2165  ;;  %v155_v54 = vpop.xlane.xlu0 %154  ;;  %v354_v55 = vpack.c.bf16 %v339_v39, %v338_v45  ;;  %v300_v59 = vmul.f32 %v2164_v40, %v252_v41 }
  0xe4   :  { %2171 = vrsqrt.f32 %v272_v48  ;;  %v273_v4 = vadd.f32 1e-05, %v241_v49  ;;  %v194_v26 = vmul.f32 0.0078125, %v155_v54  ;;  %v301_v2 = vmul.f32 %v2166_v52, %v253_v46 }
  0xe5   :  { %v211_v5 = vmul.f32 %v2603_v53, %v2603_v53  ;;  %587 = vmatmul.mubr.bf16.vlgmr.msra.gmra.mxu0 %v354_v55  ;;  %700 = vmatmul.mubr.bf16.vlgmr.msra.gmra.mxu1 %v354_v55  ;;  %v157_v30 = vpop.xlane.xlu1 %156  ;;  %v320_v7 = vmul.f32 %v2583_v19, %v300_v59 }
  0xe6   :  { %2173 = vrsqrt.f32 %v273_v4  ;;  %v226_v12 = vsub.f32 %v194_v26, %v210_v51  ;;  %v195_v13 = vmul.f32 0.0078125, %v157_v30  ;;  %596 = vmatprep.mubr.bf16.mxu0 %v2437_v58  ;;  %709 = vmatprep.mubr.bf16.mxu1 %v2437_v58  ;;  %v321_v14 = vmul.f32 %v2583_v19, %v301_v2  ;;  %v2141_v4 = vld [vmem:[#allocation8 + $0x20] sm:$0xff]  }
  0xe7   :  { %v111_v15 = vpop.xlane.xlu0 %110  ;;  %1940 = vmatpush3.bf16.msra.mxu0 %v2129_v60  ;;  %2004 = vmatpush3.bf16.msra.mxu1 %v2130_v63  ;;  %v340_v29 = vadd.f32 %v2590_v31, %v320_v7  ;;  %v2142_v26 = vld [vmem:[#allocation8 + $0xa0] sm:$0xff]   ;;  %v256_v7 = vsub.f32 %v2509_v20, %v2578_v10 }
  0xe8   :  { %v242_v22 = vmax.f32 %v226_v12, 0.0  ;;  %v227_v0 = vsub.f32 %v195_v13, %v211_v5  ;;  %v2611_v9 = vmul.f32 0.0078125, %v111_v15  ;;  %v341_v24 = vadd.f32 %v2590_v31, %v321_v14  ;;  %1941 = vmatprep.subr.bf16.mxu0 %v2131_v3  ;;  %2005 = vmatprep.subr.bf16.mxu1 %v2132_v6 }
  0xe9   :  { %v2168_v28 = vpop.eup %2167  ;;  %v113_v16 = vpop.xlane.xlu1 %112  ;;  %v257_v14 = vsub.f32 %v2511_v21, %v2585_v23 }
  0xea   :  { %v274_v35 = vadd.f32 1e-05, %v242_v22  ;;  %v243_v36 = vmax.f32 %v227_v0, 0.0  ;;  %v212_v37 = vmul.f32 %v2611_v9, %v2611_v9  ;;  %v2621_v40 = vmul.f32 0.0078125, %v113_v16 }
  0xeb   :  { %v2170_v39 = vpop.eup %2169  ;;  %v159_v41 = vpop.xlane.xlu0 %158  ;;  %v355_v42 = vpack.c.bf16 %v341_v24, %v340_v29  ;;  %v302_v45 = vmul.f32 %v2168_v28, %v254_v1  ;;  %1942 = vmatpush3.bf16.msra.mxu0 %v2133_v17  ;;  %2006 = vmatpush3.bf16.msra.mxu1 %v2134_v18 }
  0xec   :  { %2175 = vrsqrt.f32 %v274_v35  ;;  %v275_v46 = vadd.f32 1e-05, %v243_v36  ;;  %v196_v48 = vmul.f32 0.0078125, %v159_v41  ;;  %v303_v49 = vmul.f32 %v2170_v39, %v255_v34  ;;  %1943 = vmatprep.subr.bf16.mxu0 %v2135_v25  ;;  %2007 = vmatprep.subr.bf16.mxu1 %v2136_v27 }
  0xed   :  { %v213_v51 = vmul.f32 %v2621_v40, %v2621_v40  ;;  %597 = vmatmul.mubr.bf16.gmra.mxu0 %v355_v42  ;;  %710 = vmatmul.mubr.bf16.gmra.mxu1 %v355_v42  ;;  %v161_v52 = vpop.xlane.xlu1 %160  ;;  %v322_v54 = vmul.f32 %v2583_v19, %v302_v45  ;;  %v258_v45 = vsub.f32 %v2519_v32, %v2593_v38 }
  0xee   :  { %2177 = vrsqrt.f32 %v275_v46  ;;  %v228_v55 = vsub.f32 %v196_v48, %v212_v37  ;;  %v197_v59 = vmul.f32 0.0078125, %v161_v52  ;;  %606 = vmatprep.mubr.bf16.mxu0 %v2437_v58  ;;  %719 = vmatprep.mubr.bf16.mxu1 %v2437_v58  ;;  %v323_v60 = vmul.f32 %v2583_v19, %v303_v49 }
  0xef   :  { %v115_v63 = vpop.xlane.xlu0 %114  ;;  %1944 = vmatpush3.bf16.msra.mxu0 %v2137_v8  ;;  %2008 = vmatpush3.bf16.msra.mxu1 %v2138_v43  ;;  %v342_v13 = vadd.f32 %v2590_v31, %v322_v54  ;;  %v259_v46 = vsub.f32 %v2521_v33, %v2603_v53 }
  0xf0   :  { %v244_v2 = vmax.f32 %v228_v55, 0.0  ;;  %v229_v3 = vsub.f32 %v197_v59, %v213_v51  ;;  %v2629_v6 = vmul.f32 0.0078125, %v115_v63  ;;  %v343_v5 = vadd.f32 %v2590_v31, %v323_v60  ;;  %1945 = vmatprep.subr.bf16.mxu0 %v2139_v11  ;;  %2009 = vmatprep.subr.bf16.mxu1 %v2140_v50 }
  0xf1   :  { %v2172_v30 = vpop.eup %2171  ;;  %v117_v12 = vpop.xlane.xlu1 %116 }
  0xf2   :  { %v276_v15 = vadd.f32 1e-05, %v244_v2  ;;  %v245_v17 = vmax.f32 %v229_v3, 0.0  ;;  %v214_v18 = vmul.f32 %v2629_v6, %v2629_v6  ;;  %v2639_v0 = vmul.f32 0.0078125, %v117_v12 }
  0xf3   :  { %v2174_v22 = vpop.eup %2173  ;;  %v163_v24 = vpop.xlane.xlu0 %162  ;;  %v356_v25 = vpack.c.bf16 %v343_v5, %v342_v13  ;;  %v304_v27 = vmul.f32 %v2172_v30, %v256_v7  ;;  %1946 = vmatpush3.bf16.msra.mxu0 %v2141_v4  ;;  %2010 = vmatpush3.bf16.msra.mxu1 %v2142_v26  ;;  %v260_v2 = vsub.f32 %v2529_v44, %v2611_v9 }
  0xf4   :  { %2179 = vrsqrt.f32 %v276_v15  ;;  %v277_v20 = vadd.f32 1e-05, %v245_v17  ;;  %v198_v10 = vmul.f32 0.0078125, %v163_v24  ;;  %v305_v28 = vmul.f32 %v2174_v22, %v257_v14 }
  0xf5   :  { %v215_v21 = vmul.f32 %v2639_v0, %v2639_v0  ;;  %607 = vmatmul.mubr.bf16.gmra.mxu0 %v356_v25  ;;  %720 = vmatmul.mubr.bf16.gmra.mxu1 %v356_v25  ;;  %v165_v23 = vpop.xlane.xlu1 %164  ;;  %v324_v1 = vmul.f32 %v2583_v19, %v304_v27  ;;  %v261_v13 = vsub.f32 %v2531_v47, %v2621_v40 }
  0xf6   :  { %2181 = vrsqrt.f32 %v277_v20  ;;  %v230_v16 = vsub.f32 %v198_v10, %v214_v18  ;;  %v199_v29 = vmul.f32 0.0078125, %v165_v23  ;;  %616 = vmatprep.mubr.bf16.mxu0 %v2437_v58  ;;  %729 = vmatprep.mubr.bf16.mxu1 %v2437_v58  ;;  %v325_v34 = vmul.f32 %v2583_v19, %v305_v28 }
  0xf7   :  { %v119_v35 = vpop.xlane.xlu0 %118  ;;  %v344_v43 = vadd.f32 %v2590_v31, %v324_v1  ;;  %v262_v47 = vsub.f32 %v2539_v56, %v2629_v6  ;;  %v263_v10 = vsub.f32 %v2541_v57, %v2639_v0 }
  0xf8   :  { %v246_v36 = vmax.f32 %v230_v16, 0.0  ;;  %v231_v37 = vsub.f32 %v199_v29, %v215_v21  ;;  %v2647_v39 = vmul.f32 0.0078125, %v119_v35  ;;  %v345_v41 = vadd.f32 %v2590_v31, %v325_v34 }
  0xf9   :  { %v2176_v42 = vpop.eup %2175  ;;  %v121_v8 = vpop.xlane.xlu1 %120 }
  0xfa   :  { %v278_v48 = vadd.f32 1e-05, %v246_v36  ;;  %v247_v49 = vmax.f32 %v231_v37, 0.0  ;;  %v216_v11 = vmul.f32 %v2647_v39, %v2647_v39  ;;  %v2657_v51 = vmul.f32 0.0078125, %v121_v8 }
  0xfb   :  { %v2178_v50 = vpop.eup %2177  ;;  %v167_v52 = vpop.xlane.xlu0 %166  ;;  %v357_v54 = vpack.c.bf16 %v345_v41, %v344_v43  ;;  %v306_v55 = vmul.f32 %v2176_v42, %v258_v45  ;;  %v264_v6 = vsub.f32 %v2551_v61, %v2647_v39  ;;  %v2144_v43 = vld [vmem:[#allocation8 + $0xd8] sm:$0xff]  }
  0xfc   :  { %2183 = vrsqrt.f32 %v278_v48  ;;  %v279_v59 = vadd.f32 1e-05, %v247_v49  ;;  %v200_v32 = vmul.f32 0.0078125, %v167_v52  ;;  %v307_v38 = vmul.f32 %v2178_v50, %v259_v46  ;;  %v2145_v46 = vld [vmem:[#allocation8 + $0x18] sm:$0xff]   ;;  %2011 = vmatprep.subr.bf16.mxu1 %v2144_v43  ;;  %v2147_v49 = vld [vmem:[#allocation8 + $0x50] sm:$0xff]   ;;  %v2154_v52 = vld [vmem:[#allocation8 + $0x88] sm:$0xff]  }
  0xfd   :  { %v217_v60 = vmul.f32 %v2657_v51, %v2657_v51  ;;  %617 = vmatmul.mubr.bf16.gmra.mxu0 %v357_v54  ;;  %730 = vmatmul.mubr.bf16.gmra.mxu1 %v357_v54  ;;  %v169_v33 = vpop.xlane.xlu1 %168  ;;  %v326_v53 = vmul.f32 %v2583_v19, %v306_v55  ;;  %v265_v34 = vsub.f32 %v2553_v62, %v2657_v51  ;;  %v2143_v62 = vld [vmem:[#allocation8 + $0x58] sm:$0xff]   ;;  %v2150_v50 = vld [vmem:[#allocation8 + $0x90] sm:$0xff]   ;;  %v2153_v51 = vld [vmem:[#allocation8 + $0x8] sm:$0xff]  }
  0xfe   :  { %2185 = vrsqrt.f32 %v279_v59  ;;  %v232_v63 = vsub.f32 %v200_v32, %v216_v11  ;;  %v201_v4 = vmul.f32 0.0078125, %v169_v33  ;;  %626 = vmatprep.mubr.bf16.mxu0 %v2437_v58  ;;  %739 = vmatprep.mubr.bf16.mxu1 %v2437_v58  ;;  %v327_v26 = vmul.f32 %v2583_v19, %v307_v38  ;;  %v2146_v48 = vld [vmem:[#allocation8 + $0x98] sm:$0xff]   ;;  %v2148_v11 = vld [vmem:[#allocation8 + $0xd0] sm:$0xff]   ;;  %v2155_v54 = vld [vmem:[#allocation8 + $0x40] sm:$0xff]  }
  0xff   :  { %v346_v30 = vadd.f32 %v2590_v31, %v326_v53  ;;  %1947 = vmatprep.subr.bf16.mxu0 %v2143_v62  ;;  %2012 = vmatpush3.bf16.msra.mxu1 %v2146_v48  ;;  %v2156_v55 = vld [vmem:[#allocation8 + $0xc0] sm:$0xff]  }
 0x100   :  { %v248_v3 = vmax.f32 %v232_v63, 0.0  ;;  %v233_v5 = vsub.f32 %v201_v4, %v217_v60  ;;  %v347_v7 = vadd.f32 %v2590_v31, %v327_v26  ;;  %1948 = vmatpush3.bf16.msra.mxu0 %v2145_v46  ;;  %2013 = vmatprep.subr.bf16.mxu1 %v2148_v11  ;;  %v2157_v59 = vld [vmem:[#allocation8] sm:$0xff]  }
 0x101   :  { %v2180_v12 = vpop.eup %2179  ;;  %1949 = vmatprep.subr.bf16.mxu0 %v2147_v49  ;;  %v2158_v32 = vld [vmem:[#allocation8 + $0x80] sm:$0xff]  }
 0x102   :  { %v280_v14 = vadd.f32 1e-05, %v248_v3  ;;  %v249_v15 = vmax.f32 %v233_v5, 0.0  ;;  %v358_v17 = vpack.c.bf16 %v347_v7, %v346_v30  ;;  %v308_v18 = vmul.f32 %v2180_v12, %v260_v2 }
 0x103   :  { %v2182_v22 = vpop.eup %2181  ;;  %2014 = vmatpush3.bf16.msra.mxu1 %v2150_v50 }
 0x104   :  { %2187 = vrsqrt.f32 %v280_v14  ;;  %v281_v24 = vadd.f32 1e-05, %v249_v15  ;;  %v309_v25 = vmul.f32 %v2182_v22, %v261_v13  ;;  %v328_v44 = vmul.f32 %v2583_v19, %v308_v18 }
 0x105   :  { %627 = vmatmul.mubr.bf16.gmra.mxu0 %v358_v17  ;;  %740 = vmatmul.mubr.bf16.gmra.mxu1 %v358_v17 }
 0x106   :  { %2189 = vrsqrt.f32 %v281_v24  ;;  %636 = vmatprep.mubr.bf16.mxu0 %v2437_v58  ;;  %749 = vmatprep.mubr.bf16.mxu1 %v2437_v58  ;;  %v329_v9 = vmul.f32 %v2583_v19, %v309_v25  ;;  %v348_v40 = vadd.f32 %v2590_v31, %v328_v44 }
 0x108   :  { %v349_v27 = vadd.f32 %v2590_v31, %v329_v9 }
 0x109   :  { %v2184_v20 = vpop.eup %2183 }
 0x10a   :  { %v359_v28 = vpack.c.bf16 %v349_v27, %v348_v40  ;;  %v310_v21 = vmul.f32 %v2184_v20, %v262_v47 }
 0x10b   :  { %v2186_v23 = vpop.eup %2185 }
 0x10c   :  { %v311_v1 = vmul.f32 %v2186_v23, %v263_v10  ;;  %v330_v16 = vmul.f32 %v2583_v19, %v310_v21 }
 0x10d   :  { %637 = vmatmul.mubr.bf16.gmra.mxu0 %v359_v28  ;;  %750 = vmatmul.mubr.bf16.gmra.mxu1 %v359_v28 }
 0x10e   :  { %646 = vmatprep.mubr.bf16.mxu0 %v2437_v58  ;;  %759 = vmatprep.mubr.bf16.mxu1 %v2437_v58  ;;  %v331_v56 = vmul.f32 %v2583_v19, %v311_v1  ;;  %v350_v29 = vadd.f32 %v2590_v31, %v330_v16 }
 0x110   :  { %v351_v57 = vadd.f32 %v2590_v31, %v331_v56 }
 0x111   :  { %v2188_v0 = vpop.eup %2187 }
 0x112   :  { %v360_v35 = vpack.c.bf16 %v351_v57, %v350_v29  ;;  %v312_v36 = vmul.f32 %v2188_v0, %v264_v6 }
 0x113   :  { %v2190_v37 = vpop.eup %2189 }
 0x114   :  { %v313_v41 = vmul.f32 %v2190_v37, %v265_v34  ;;  %v332_v42 = vmul.f32 %v2583_v19, %v312_v36 }
 0x115   :  { %647 = vmatmul.mubr.bf16.gmra.mxu0 %v360_v35  ;;  %760 = vmatmul.mubr.bf16.gmra.mxu1 %v360_v35 }
 0x116   :  { %656 = vmatprep.mubr.bf16.mxu0 %v2437_v58  ;;  %769 = vmatprep.mubr.bf16.mxu1 %v2437_v58  ;;  %v333_v61 = vmul.f32 %v2583_v19, %v313_v41  ;;  %v352_v39 = vadd.f32 %v2590_v31, %v332_v42  ;;  %v2149_v58 = vld [vmem:[#allocation8 + $0x10] sm:$0xff]   ;;  %v2151_v19 = vld [vmem:[#allocation8 + $0x48] sm:$0xff]  }
 0x117   :  { %1950 = vmatpush3.bf16.msra.mxu0 %v2149_v58 }
 0x118   :  { %v353_v45 = vadd.f32 %v2590_v31, %v333_v61  ;;  %v2152_v31 = vld [vmem:[#allocation8 + $0xc8] sm:$0xff]   ;;  %1951 = vmatprep.subr.bf16.mxu0 %v2151_v19 }
 0x119   :  { %2015 = vmatprep.subr.bf16.mxu1 %v2152_v31 }
 0x11a   :  { %v361_v8 = vpack.c.bf16 %v353_v45, %v352_v39  ;;  %2016 = vmatpush3.bf16.msra.mxu1 %v2154_v52 }
 0x11b   :  { %1952 = vmatpush3.bf16.msra.mxu0 %v2153_v51  ;;  %2017 = vmatprep.subr.bf16.mxu1 %v2156_v55 }
 0x11c   :  { %1953 = vmatprep.subr.bf16.mxu0 %v2155_v54 }
 0x11d   :  { %657 = vmatmul.mubr.bf16.gmra.mxu0 %v361_v8  ;;  %770 = vmatmul.mubr.bf16.gmra.mxu1 %v361_v8 }
 0x11e   :  { %2018 = vmatpush3.bf16.msra.mxu1 %v2158_v32 }
 0x11f   :  { %1954 = vmatpush3.bf16.msra.mxu0 %v2157_v59 }
 0x1a5   :  { %v588_v38 = vpop.f32.mrf.mxu0  ;;  %v701_v60 = vpop.f32.mrf.mxu1 }
 0x1a6   :  { %v780_v33 = vmul.f32 0.044715, %v588_v38  ;;  %v782_v53 = vmul.f32 0.044715, %v701_v60  ;;  %v2697_v30 = vmul.f32 0.5, %v588_v38  ;;  %v2699_v7 = vmul.f32 0.5, %v701_v60 }
 0x1a7   :  { %v590_v63 = vpop.f32.mrf.mxu0  ;;  %v703_v4 = vpop.f32.mrf.mxu1 }
 0x1a8   :  { %v844_v26 = vmul.f32 %v780_v33, %v588_v38  ;;  %v846_v2 = vmul.f32 %v782_v53, %v701_v60  ;;  %v781_v3 = vmul.f32 0.044715, %v590_v63  ;;  %v783_v5 = vmul.f32 0.044715, %v703_v4 }
 0x1a9   :  { %v592_v12 = vpop.f32.mrf.mxu0  ;;  %v705_v13 = vpop.f32.mrf.mxu1  ;;  %v2701_v14 = vmul.f32 0.5, %v590_v63  ;;  %v2703_v15 = vmul.f32 0.5, %v703_v4 }
 0x1aa   :  { %v908_v17 = vmul.f32 %v844_v26, %v588_v38  ;;  %v910_v18 = vmul.f32 %v846_v2, %v701_v60  ;;  %v845_v22 = vmul.f32 %v781_v3, %v590_v63  ;;  %v847_v24 = vmul.f32 %v783_v5, %v703_v4 }
 0x1ab   :  { %v784_v25 = vmul.f32 0.044715, %v592_v12  ;;  %v2705_v44 = vmul.f32 0.5, %v592_v12  ;;  %v786_v9 = vmul.f32 0.044715, %v705_v13  ;;  %v2707_v47 = vmul.f32 0.5, %v705_v13  ;;  %v2709_v40 = vpop.f32.mrf.mxu0  ;;  %v2711_v27 = vpop.f32.mrf.mxu1 }
 0x1ac   :  { %v972_v20 = vadd.f32 %v908_v17, %v588_v38  ;;  %v974_v10 = vadd.f32 %v910_v18, %v701_v60  ;;  %v909_v28 = vmul.f32 %v845_v22, %v590_v63  ;;  %v911_v21 = vmul.f32 %v847_v24, %v703_v4 }
 0x1ad   :  { %v848_v23 = vmul.f32 %v784_v25, %v592_v12  ;;  %v850_v1 = vmul.f32 %v786_v9, %v705_v13  ;;  %v785_v16 = vmul.f32 0.044715, %v2709_v40  ;;  %v787_v56 = vmul.f32 0.044715, %v2711_v27  ;;  %v2715_v6 = vpop.f32.mrf.mxu0  ;;  %v2717_v29 = vpop.f32.mrf.mxu1 }
 0x1ae   :  { %v1036_v57 = vmul.f32 0.7978846, %v972_v20  ;;  %v1038_v0 = vmul.f32 0.7978846, %v974_v10  ;;  %v973_v34 = vadd.f32 %v909_v28, %v590_v63  ;;  %v975_v35 = vadd.f32 %v911_v21, %v703_v4 }
 0x1af   :  { %v912_v36 = vmul.f32 %v848_v23, %v592_v12  ;;  %v914_v37 = vmul.f32 %v850_v1, %v705_v13  ;;  %v849_v41 = vmul.f32 %v785_v16, %v2709_v40  ;;  %v851_v42 = vmul.f32 %v787_v56, %v2711_v27  ;;  %v2721_v61 = vpop.f32.mrf.mxu0  ;;  %v2723_v39 = vpop.f32.mrf.mxu1 }
 0x1b0   :  { %2191 = vtanh.f32 %v1036_v57  ;;  %v1037_v45 = vmul.f32 0.7978846, %v973_v34  ;;  %v1039_v8 = vmul.f32 0.7978846, %v975_v35  ;;  %v788_v62 = vmul.f32 0.044715, %v2715_v6 }
 0x1b1   :  { %2193 = vtanh.f32 %v1038_v0  ;;  %v976_v43 = vadd.f32 %v912_v36, %v592_v12  ;;  %v978_v46 = vadd.f32 %v914_v37, %v705_v13  ;;  %v913_v48 = vmul.f32 %v849_v41, %v2709_v40  ;;  %v2727_v49 = vpop.f32.mrf.mxu0  ;;  %v2729_v11 = vpop.f32.mrf.mxu1 }
 0x1b2   :  { %2195 = vtanh.f32 %v1037_v45  ;;  %v915_v58 = vmul.f32 %v851_v42, %v2711_v27  ;;  %v852_v50 = vmul.f32 %v788_v62, %v2715_v6  ;;  %v790_v19 = vmul.f32 0.044715, %v2717_v29 }
 0x1b3   :  { %2197 = vtanh.f32 %v1039_v8  ;;  %v1040_v31 = vmul.f32 0.7978846, %v976_v43  ;;  %v1042_v51 = vmul.f32 0.7978846, %v978_v46  ;;  %v977_v52 = vadd.f32 %v913_v48, %v2709_v40  ;;  %v2735_v54 = vpop.f32.mrf.mxu0  ;;  %v2737_v55 = vpop.f32.mrf.mxu1 }
 0x1b4   :  { %v979_v59 = vadd.f32 %v915_v58, %v2711_v27  ;;  %v916_v32 = vmul.f32 %v852_v50, %v2715_v6  ;;  %v854_v38 = vmul.f32 %v790_v19, %v2717_v29  ;;  %v789_v60 = vmul.f32 0.044715, %v2721_v61 }
 0x1b5   :  { %2199 = vtanh.f32 %v1040_v31  ;;  %v1041_v33 = vmul.f32 0.7978846, %v977_v52  ;;  %v791_v53 = vmul.f32 0.044715, %v2723_v39  ;;  %v792_v63 = vmul.f32 0.044715, %v2727_v49  ;;  %v2745_v4 = vpop.f32.mrf.mxu0  ;;  %v2747_v26 = vpop.f32.mrf.mxu1 }
 0x1b6   :  { %3342 = vst [vmem:[#allocation15_spill] sm:$0xff] %v2747_v26  ;;  %2201 = vtanh.f32 %v1042_v51  ;;  %v1043_v2 = vmul.f32 0.7978846, %v979_v59  ;;  %v980_v3 = vadd.f32 %v916_v32, %v2715_v6  ;;  %v918_v5 = vmul.f32 %v854_v38, %v2717_v29 }
 0x1b7   :  { %2203 = vtanh.f32 %v1041_v33  ;;  %v853_v12 = vmul.f32 %v789_v60, %v2721_v61  ;;  %v855_v13 = vmul.f32 %v791_v53, %v2723_v39  ;;  %v856_v17 = vmul.f32 %v792_v63, %v2727_v49  ;;  %v2754_v18 = vpop.f32.mrf.mxu0  ;;  %v2756_v22 = vpop.f32.mrf.mxu1 }
 0x1b8   :  { %2205 = vtanh.f32 %v1043_v2  ;;  %v1044_v24 = vmul.f32 0.7978846, %v980_v3  ;;  %v982_v25 = vadd.f32 %v918_v5, %v2717_v29  ;;  %v794_v9 = vmul.f32 0.044715, %v2729_v11 }
 0x1b9   :  { %v917_v20 = vmul.f32 %v853_v12, %v2721_v61  ;;  %v919_v10 = vmul.f32 %v855_v13, %v2723_v39  ;;  %v920_v28 = vmul.f32 %v856_v17, %v2727_v49  ;;  %v793_v21 = vmul.f32 0.044715, %v2735_v54  ;;  %v2764_v23 = vpop.f32.mrf.mxu0  ;;  %v2766_v1 = vpop.f32.mrf.mxu1 }
 0x1ba   :  { %3343 = vst [vmem:[#allocation16_spill] sm:$0xff] %v2766_v1  ;;  %2207 = vtanh.f32 %v1044_v24  ;;  %v1046_v16 = vmul.f32 0.7978846, %v982_v25  ;;  %v858_v56 = vmul.f32 %v794_v9, %v2729_v11  ;;  %v795_v57 = vmul.f32 0.044715, %v2737_v55 }
 0x1bb   :  { %v981_v0 = vadd.f32 %v917_v20, %v2721_v61  ;;  %v983_v34 = vadd.f32 %v919_v10, %v2723_v39  ;;  %v984_v35 = vadd.f32 %v920_v28, %v2727_v49  ;;  %v857_v36 = vmul.f32 %v793_v21, %v2735_v54  ;;  %v2774_v37 = vpop.f32.mrf.mxu0  ;;  %v2776_v41 = vpop.f32.mrf.mxu1 }
 0x1bc   :  { %2209 = vtanh.f32 %v1046_v16  ;;  %v922_v42 = vmul.f32 %v858_v56, %v2729_v11  ;;  %v859_v45 = vmul.f32 %v795_v57, %v2737_v55  ;;  %v796_v8 = vmul.f32 0.044715, %v2745_v4 }
 0x1bd   :  { %v2192_v62 = vpop.eup %2191  ;;  %v1045_v43 = vmul.f32 0.7978846, %v981_v0  ;;  %v1047_v46 = vmul.f32 0.7978846, %v983_v34  ;;  %v1048_v48 = vmul.f32 0.7978846, %v984_v35  ;;  %v921_v58 = vmul.f32 %v857_v36, %v2735_v54  ;;  %v2789_v33 = vpop.f32.mrf.mxu0 }
 0x1be   :  { %v2194_v50 = vpop.eup %2193  ;;  %v1228_v19 = vadd.f32 1.0, %v2192_v62  ;;  %v986_v31 = vadd.f32 %v922_v42, %v2729_v11  ;;  %v923_v51 = vmul.f32 %v859_v45, %v2737_v55  ;;  %v860_v52 = vmul.f32 %v796_v8, %v2745_v4  ;;  %3344 = vst [vmem:[#allocation17_spill] sm:$0xff] %v2789_v33  ;;  %v2791_v53 = vpop.f32.mrf.mxu1 }
 0x1bf   :  { %v2785_v59 = vpop.eup %2195  ;;  %v1230_v32 = vadd.f32 1.0, %v2194_v50  ;;  %2211 = vtanh.f32 %v1045_v43  ;;  %v985_v38 = vadd.f32 %v921_v58, %v2735_v54  ;;  %v798_v60 = vmul.f32 0.044715, %v2747_v26  ;;  %3345 = vst [vmem:[#allocation18_spill] sm:$0xff] %v2791_v53 }
 0x1c0   :  { %v2793_v63 = vpop.eup %2197  ;;  %v2796_v2 = vmul.f32 %v1228_v19, %v2697_v30  ;;  %2213 = vtanh.f32 %v1047_v46  ;;  %v1050_v3 = vmul.f32 0.7978846, %v986_v31  ;;  %v987_v5 = vadd.f32 %v923_v51, %v2737_v55  ;;  %v2809_v16 = vpop.f32.mrf.mxu1 }
 0x1c1   :  { %v2800_v12 = vmul.f32 %v1230_v32, %v2699_v7  ;;  %2215 = vtanh.f32 %v1048_v48  ;;  %v1049_v13 = vmul.f32 0.7978846, %v985_v38  ;;  %v924_v17 = vmul.f32 %v860_v52, %v2745_v4  ;;  %v2807_v7 = vpop.f32.mrf.mxu0  ;;  %3347 = vst [vmem:[#allocation20_spill] sm:$0xff] %v2809_v16 }
 0x1c2   :  { %v2200_v24 = vpop.eup %2199  ;;  %2217 = vtanh.f32 %v1050_v3  ;;  %v1051_v25 = vmul.f32 0.7978846, %v987_v5  ;;  %v862_v9 = vmul.f32 %v798_v60, %v2747_v26  ;;  %v797_v20 = vmul.f32 0.044715, %v2754_v18  ;;  %3346 = vst [vmem:[#allocation19_spill] sm:$0xff] %v2807_v7  ;;  %v2835_v51 = vpop.f32.mrf.mxu1 }
 0x1c3   :  { %v2202_v30 = vpop.eup %2201  ;;  %v1232_v10 = vadd.f32 1.0, %v2200_v24  ;;  %2219 = vtanh.f32 %v1049_v13  ;;  %v988_v28 = vadd.f32 %v924_v17, %v2745_v4  ;;  %v799_v21 = vmul.f32 0.044715, %v2756_v22  ;;  %v2833_v31 = vpop.f32.mrf.mxu0  ;;  %3349 = vst [vmem:[#allocation22_spill] sm:$0xff] %v2835_v51 }
 0x1c4   :  { %v2811_v56 = vpop.eup %2203  ;;  %v1234_v57 = vadd.f32 1.0, %v2202_v30  ;;  %2221 = vtanh.f32 %v1051_v25  ;;  %v926_v0 = vmul.f32 %v862_v9, %v2747_v26  ;;  %v861_v34 = vmul.f32 %v797_v20, %v2754_v18  ;;  %3348 = vst [vmem:[#allocation21_spill] sm:$0xff] %v2833_v31 }
 0x1c5   :  { %v2815_v35 = vpop.eup %2205  ;;  %v2818_v36 = vmul.f32 %v1232_v10, %v2705_v44  ;;  %v1052_v42 = vmul.f32 0.7978846, %v988_v28  ;;  %v863_v45 = vmul.f32 %v799_v21, %v2756_v22  ;;  %v800_v8 = vmul.f32 0.044715, %v2764_v23  ;;  %v2851_v21 = vpop.f32.mrf.mxu0 }
 0x1c6   :  { %v2823_v62 = vmul.f32 %v1234_v57, %v2707_v47  ;;  %v990_v43 = vadd.f32 %v926_v0, %v2747_v26  ;;  %v925_v46 = vmul.f32 %v861_v34, %v2754_v18  ;;  %v802_v48 = vmul.f32 0.044715, %v2766_v1  ;;  %3350 = vst [vmem:[#allocation23_spill] sm:$0xff] %v2851_v21  ;;  %v2853_v57 = vpop.f32.mrf.mxu1 }
 0x1c7   :  { %v2828_v58 = vpop.eup %2207  ;;  %2223 = vtanh.f32 %v1052_v42  ;;  %v927_v44 = vmul.f32 %v863_v45, %v2756_v22  ;;  %v864_v50 = vmul.f32 %v800_v8, %v2764_v23  ;;  %v801_v19 = vmul.f32 0.044715, %v2774_v37  ;;  %3351 = vst [vmem:[#allocation24_spill] sm:$0xff] %v2853_v57 }
 0x1c8   :  { %v1054_v47 = vmul.f32 0.7978846, %v990_v43  ;;  %v989_v52 = vadd.f32 %v925_v46, %v2754_v18  ;;  %v866_v32 = vmul.f32 %v802_v48, %v2766_v1  ;;  %v803_v38 = vmul.f32 0.044715, %v2776_v41 }
 0x1c9   :  { %v2840_v60 = vpop.eup %2209  ;;  %v991_v3 = vadd.f32 %v927_v44, %v2756_v22  ;;  %v928_v5 = vmul.f32 %v864_v50, %v2764_v23  ;;  %v865_v13 = vmul.f32 %v801_v19, %v2774_v37  ;;  %v804_v17 = vmul.f32 0.044715, %v2789_v33 }
 0x1ca   :  { %2225 = vtanh.f32 %v1054_v47  ;;  %v1053_v24 = vmul.f32 0.7978846, %v989_v52  ;;  %v930_v25 = vmul.f32 %v866_v32, %v2766_v1  ;;  %v867_v9 = vmul.f32 %v803_v38, %v2776_v41 }
 0x1cb   :  { %v1055_v20 = vmul.f32 0.7978846, %v991_v3  ;;  %v992_v30 = vadd.f32 %v928_v5, %v2764_v23  ;;  %v929_v10 = vmul.f32 %v865_v13, %v2774_v37  ;;  %v868_v28 = vmul.f32 %v804_v17, %v2789_v33  ;;  %v2873_v13 = vpop.f32.mrf.mxu0  ;;  %v2875_v17 = vpop.f32.mrf.mxu1 }
 0x1cc   :  { %v2855_v0 = vpop.eup %2211  ;;  %2227 = vtanh.f32 %v1053_v24  ;;  %v994_v34 = vadd.f32 %v930_v25, %v2766_v1  ;;  %v931_v42 = vmul.f32 %v867_v9, %v2776_v41  ;;  %v806_v45 = vmul.f32 0.044715, %v2791_v53  ;;  %3352 = vst [vmem:[#allocation25_spill] sm:$0xff] %v2873_v13  ;;  %3353 = vst [vmem:[#allocation26_spill] sm:$0xff] %v2875_v17 }
 0x1cd   :  { %v2860_v8 = vpop.eup %2213  ;;  %2229 = vtanh.f32 %v1055_v20  ;;  %v1056_v43 = vmul.f32 0.7978846, %v992_v30  ;;  %v993_v46 = vadd.f32 %v929_v10, %v2774_v37  ;;  %v932_v48 = vmul.f32 %v868_v28, %v2789_v33 }
 0x1ce   :  { %v2864_v44 = vpop.eup %2215  ;;  %v1058_v50 = vmul.f32 0.7978846, %v994_v34  ;;  %v995_v19 = vadd.f32 %v931_v42, %v2776_v41  ;;  %v870_v47 = vmul.f32 %v806_v45, %v2791_v53  ;;  %v805_v52 = vmul.f32 0.044715, %v2807_v7 }
 0x1cf   :  { %v2869_v32 = vpop.eup %2217  ;;  %2231 = vtanh.f32 %v1056_v43  ;;  %v1057_v38 = vmul.f32 0.7978846, %v993_v46  ;;  %v996_v3 = vadd.f32 %v932_v48, %v2789_v33  ;;  %v807_v5 = vmul.f32 0.044715, %v2809_v16 }
 0x1d0   :  { %v2877_v24 = vpop.eup %2219  ;;  %2233 = vtanh.f32 %v1058_v50  ;;  %v1059_v25 = vmul.f32 0.7978846, %v995_v19  ;;  %v934_v9 = vmul.f32 %v870_v47, %v2791_v53  ;;  %v869_v20 = vmul.f32 %v805_v52, %v2807_v7  ;;  %v2891_v19 = vpop.f32.mrf.mxu0 }
 0x1d1   :  { %v2881_v30 = vpop.eup %2221  ;;  %2235 = vtanh.f32 %v1057_v38  ;;  %v1060_v10 = vmul.f32 0.7978846, %v996_v3  ;;  %v871_v28 = vmul.f32 %v807_v5, %v2809_v16  ;;  %v808_v34 = vmul.f32 0.044715, %v2833_v31  ;;  %v2893_v47 = vpop.f32.mrf.mxu1 }
 0x1d2   :  { %2237 = vtanh.f32 %v1059_v25  ;;  %v998_v42 = vadd.f32 %v934_v9, %v2791_v53  ;;  %v933_v45 = vmul.f32 %v869_v20, %v2807_v7  ;;  %v810_v43 = vmul.f32 0.044715, %v2835_v51  ;;  %3354 = vst [vmem:[#allocation27_spill] sm:$0xff] %v2893_v47 }
 0x1d3   :  { %2239 = vtanh.f32 %v1060_v10  ;;  %v935_v46 = vmul.f32 %v871_v28, %v2809_v16  ;;  %v872_v48 = vmul.f32 %v808_v34, %v2833_v31  ;;  %v809_v50 = vmul.f32 0.044715, %v2851_v21 }
 0x1d4   :  { %v2895_v52 = vpop.eup %2223  ;;  %v1062_v38 = vmul.f32 0.7978846, %v998_v42  ;;  %v997_v3 = vadd.f32 %v933_v45, %v2807_v7  ;;  %v874_v5 = vmul.f32 %v810_v43, %v2835_v51  ;;  %v811_v25 = vmul.f32 0.044715, %v2853_v57 }
 0x1d5   :  { %v999_v9 = vadd.f32 %v935_v46, %v2809_v16  ;;  %v936_v20 = vmul.f32 %v872_v48, %v2833_v31  ;;  %v873_v10 = vmul.f32 %v809_v50, %v2851_v21  ;;  %v812_v28 = vmul.f32 0.044715, %v2873_v13  ;;  %v2911_v48 = vpop.f32.mrf.mxu0  ;;  %v2913_v50 = vpop.f32.mrf.mxu1 }
 0x1d6   :  { %2241 = vtanh.f32 %v1062_v38  ;;  %v1061_v34 = vmul.f32 0.7978846, %v997_v3  ;;  %v938_v53 = vmul.f32 %v874_v5, %v2835_v51  ;;  %v875_v42 = vmul.f32 %v811_v25, %v2853_v57  ;;  %3356 = vst [vmem:[#allocation29_spill] sm:$0xff] %v2913_v50 }
 0x1d7   :  { %v2906_v33 = vpop.eup %2225  ;;  %v1063_v45 = vmul.f32 0.7978846, %v999_v9  ;;  %v1000_v43 = vadd.f32 %v936_v20, %v2833_v31  ;;  %v937_v7 = vmul.f32 %v873_v10, %v2851_v21  ;;  %v876_v46 = vmul.f32 %v812_v28, %v2873_v13 }
 0x1d8   :  { %3355 = vst [vmem:[#allocation28_spill] sm:$0xff] %v2906_v33  ;;  %2243 = vtanh.f32 %v1061_v34  ;;  %v1002_v38 = vadd.f32 %v938_v53, %v2835_v51  ;;  %v939_v3 = vmul.f32 %v875_v42, %v2853_v57  ;;  %v814_v5 = vmul.f32 0.044715, %v2875_v17 }
 0x1d9   :  { %v2918_v25 = vpop.eup %2227  ;;  %2245 = vtanh.f32 %v1063_v45  ;;  %v1064_v9 = vmul.f32 0.7978846, %v1000_v43  ;;  %v1001_v20 = vadd.f32 %v937_v7, %v2851_v21  ;;  %v940_v10 = vmul.f32 %v876_v46, %v2873_v13  ;;  %v2929_v43 = vpop.f32.mrf.mxu0 }
 0x1da   :  { %v2922_v28 = vpop.eup %2229  ;;  %v1066_v31 = vmul.f32 0.7978846, %v1002_v38  ;;  %v1003_v16 = vadd.f32 %v939_v3, %v2853_v57  ;;  %v878_v34 = vmul.f32 %v814_v5, %v2875_v17  ;;  %v813_v53 = vmul.f32 0.044715, %v2891_v19  ;;  %v2931_v7 = vpop.f32.mrf.mxu1 }
 0x1db   :  { %2247 = vtanh.f32 %v1064_v9  ;;  %v1065_v42 = vmul.f32 0.7978846, %v1001_v20  ;;  %v1004_v51 = vadd.f32 %v940_v10, %v2873_v13  ;;  %v815_v45 = vmul.f32 0.044715, %v2893_v47 }
 0x1dc   :  { %v2933_v46 = vpop.eup %2231  ;;  %2249 = vtanh.f32 %v1066_v31  ;;  %v1067_v38 = vmul.f32 0.7978846, %v1003_v16  ;;  %v942_v3 = vmul.f32 %v878_v34, %v2875_v17  ;;  %v877_v5 = vmul.f32 %v813_v53, %v2891_v19 }
 0x1dd   :  { %v2937_v57 = vpop.eup %2233  ;;  %2251 = vtanh.f32 %v1065_v42  ;;  %v1068_v9 = vmul.f32 0.7978846, %v1004_v51  ;;  %v879_v20 = vmul.f32 %v815_v45, %v2893_v47  ;;  %v816_v10 = vmul.f32 0.044715, %v2911_v48  ;;  %v2951_v45 = vpop.f32.mrf.mxu0 }
 0x1de   :  { %3357 = vst [vmem:[#allocation30_spill] sm:$0xff] %v2937_v57  ;;  %v2941_v13 = vpop.eup %2235  ;;  %2253 = vtanh.f32 %v1067_v38  ;;  %v1006_v21 = vadd.f32 %v942_v3, %v2875_v17  ;;  %v941_v31 = vmul.f32 %v877_v5, %v2891_v19  ;;  %v818_v16 = vmul.f32 0.044715, %v2913_v50  ;;  %v2953_v57 = vpop.f32.mrf.mxu1 }
 0x1df   :  { %v2946_v34 = vpop.eup %2237  ;;  %2255 = vtanh.f32 %v1068_v9  ;;  %v943_v53 = vmul.f32 %v879_v20, %v2893_v47  ;;  %v880_v51 = vmul.f32 %v816_v10, %v2911_v48  ;;  %v1105_v42 = vmul.f32 0.5, %v2709_v40  ;;  %3358 = vst [vmem:[#allocation31_spill] sm:$0xff] %v2953_v57 }
 0x1e0   :  { %v2955_v38 = vpop.eup %2239  ;;  %v1070_v3 = vmul.f32 0.7978846, %v1006_v21  ;;  %v1005_v5 = vadd.f32 %v941_v31, %v2891_v19  ;;  %v882_v17 = vmul.f32 %v818_v16, %v2913_v50  ;;  %v1229_v33 = vadd.f32 1.0, %v2785_v59 }
 0x1e1   :  { %3359 = vst [vmem:[#allocation32_spill] sm:$0xff] %v2955_v38  ;;  %v1007_v9 = vadd.f32 %v943_v53, %v2893_v47  ;;  %v944_v20 = vmul.f32 %v880_v51, %v2911_v48  ;;  %v1233_v10 = vadd.f32 1.0, %v2811_v56  ;;  %v1107_v40 = vmul.f32 0.5, %v2711_v27  ;;  %v2970_v47 = vpop.f32.mrf.mxu0  ;;  %v2972_v51 = vpop.f32.mrf.mxu1 }
 0x1e2   :  { %2257 = vtanh.f32 %v1070_v3  ;;  %v1069_v1 = vmul.f32 0.7978846, %v1005_v5  ;;  %v946_v26 = vmul.f32 %v882_v17, %v2913_v50  ;;  %v1293_v21 = vmul.f32 %v1229_v33, %v2701_v14 }
 0x1e3   :  { %v2966_v38 = vpop.eup %2241  ;;  %v1071_v31 = vmul.f32 0.7978846, %v1007_v9  ;;  %v1008_v16 = vadd.f32 %v944_v20, %v2911_v48  ;;  %v1297_v59 = vmul.f32 %v1233_v10, %v1105_v42  ;;  %v1231_v53 = vadd.f32 1.0, %v2793_v63 }
 0x1e4   :  { %2259 = vtanh.f32 %v1069_v1  ;;  %v1010_v27 = vadd.f32 %v946_v26, %v2913_v50  ;;  %v1235_v56 = vadd.f32 1.0, %v2815_v35  ;;  %v817_v17 = vmul.f32 0.044715, %v2929_v43 }
 0x1e5   :  { %v2977_v14 = vpop.eup %2243  ;;  %2261 = vtanh.f32 %v1071_v31  ;;  %v1072_v33 = vmul.f32 0.7978846, %v1008_v16  ;;  %v1357_v3 = vpack.c.bf16 %v1297_v59, %v1293_v21  ;;  %v1295_v42 = vmul.f32 %v1231_v53, %v2703_v15  ;;  %v2989_v21 = vpop.f32.mrf.mxu0 }
 0x1e6   :  { %v2980_v5 = vpop.eup %2245  ;;  %v1074_v63 = vmul.f32 0.7978846, %v1010_v27  ;;  %v1299_v9 = vmul.f32 %v1235_v56, %v1107_v40  ;;  %v881_v20 = vmul.f32 %v817_v17, %v2929_v43  ;;  %v819_v1 = vmul.f32 0.044715, %v2931_v7  ;;  %3360 = vst [vmem:[#allocation33_spill] sm:$0xff] %v2989_v21  ;;  %v2991_v15 = vpop.f32.mrf.mxu1 }
 0x1e7   :  { %2263 = vtanh.f32 %v1072_v33  ;;  %1676 = vmatprep.mubr.bf16.mxu0 %v1357_v3  ;;  %v1356_v26 = vpack.c.bf16 %v2818_v36, %v2796_v2  ;;  %v1358_v35 = vpack.c.bf16 %v2823_v62, %v2800_v12  ;;  %v820_v10 = vmul.f32 0.044715, %v2951_v45  ;;  %3361 = vst [vmem:[#allocation34_spill] sm:$0xff] %v2991_v15 }
 0x1e8   :  { %v2993_v31 = vpop.eup %2247  ;;  %2265 = vtanh.f32 %v1074_v63  ;;  %v1359_v40 = vpack.c.bf16 %v1299_v9, %v1295_v42  ;;  %v945_v16 = vmul.f32 %v881_v20, %v2929_v43  ;;  %v883_v59 = vmul.f32 %v819_v1, %v2931_v7 }
 0x1e9   :  { %v2997_v53 = vpop.eup %2249  ;;  %1677 = vmatmul.mubr.bf16.vlgmr.msra.gmra.mxu0 %v1356_v26  ;;  %v884_v2 = vmul.f32 %v820_v10, %v2951_v45  ;;  %v822_v12 = vmul.f32 0.044715, %v2953_v57  ;;  %v821_v36 = vmul.f32 0.044715, %v2970_v47  ;;  %v823_v62 = vmul.f32 0.044715, %v2972_v51 }
 0x1ea   :  { %v3003_v27 = vpop.eup %2251  ;;  %1773 = vmatprep.mubr.bf16.mxu1 %v1359_v40  ;;  %v1009_v56 = vadd.f32 %v945_v16, %v2929_v43  ;;  %v947_v17 = vmul.f32 %v883_v59, %v2931_v7  ;;  %v824_v33 = vmul.f32 0.044715, %v2989_v21  ;;  %v826_v3 = vmul.f32 0.044715, %v2991_v15 }
 0x1eb   :  { %v3009_v42 = vpop.eup %2253  ;;  %1774 = vmatmul.mubr.bf16.vlgmr.msra.gmra.mxu1 %v1358_v35  ;;  %v948_v63 = vmul.f32 %v884_v2, %v2951_v45  ;;  %v886_v9 = vmul.f32 %v822_v12, %v2953_v57  ;;  %v885_v20 = vmul.f32 %v821_v36, %v2970_v47  ;;  %v887_v1 = vmul.f32 %v823_v62, %v2972_v51 }
 0x1ec   :  { %v3015_v26 = vpop.eup %2255  ;;  %v1073_v10 = vmul.f32 0.7978846, %v1009_v56  ;;  %v1011_v40 = vadd.f32 %v947_v17, %v2931_v7  ;;  %v888_v16 = vmul.f32 %v824_v33, %v2989_v21  ;;  %v890_v59 = vmul.f32 %v826_v3, %v2991_v15 }
 0x1ed   :  { %3362 = vst [vmem:[#allocation35_spill] sm:$0xff] %v3015_v26  ;;  %v1012_v50 = vadd.f32 %v948_v63, %v2951_v45  ;;  %v950_v35 = vmul.f32 %v886_v9, %v2953_v57  ;;  %v949_v2 = vmul.f32 %v885_v20, %v2970_v47  ;;  %v951_v12 = vmul.f32 %v887_v1, %v2972_v51  ;;  %v3031_v9 = vpop.f32.mrf.mxu0 }
 0x1ee   :  { %2267 = vtanh.f32 %v1073_v10  ;;  %v1075_v36 = vmul.f32 0.7978846, %v1011_v40  ;;  %v952_v62 = vmul.f32 %v888_v16, %v2989_v21  ;;  %v954_v56 = vmul.f32 %v890_v59, %v2991_v15  ;;  %v3036_v40 = vpop.f32.mrf.mxu1 }
 0x1ef   :  { %v3026_v26 = vpop.eup %2257  ;;  %v1076_v17 = vmul.f32 0.7978846, %v1012_v50  ;;  %v1014_v33 = vadd.f32 %v950_v35, %v2953_v57  ;;  %v1013_v3 = vadd.f32 %v949_v2, %v2970_v47  ;;  %v1015_v63 = vadd.f32 %v951_v12, %v2972_v51 }
 0x1f0   :  { %2269 = vtanh.f32 %v1075_v36  ;;  %v1016_v20 = vadd.f32 %v952_v62, %v2989_v21  ;;  %v1018_v1 = vadd.f32 %v954_v56, %v2991_v15  ;;  %v1109_v10 = vmul.f32 0.5, %v2721_v61  ;;  %v3047_v21 = vpop.f32.mrf.mxu0 }
 0x1f1   :  { %v3038_v16 = vpop.eup %2259  ;;  %2271 = vtanh.f32 %v1076_v17  ;;  %v1078_v50 = vmul.f32 0.7978846, %v1014_v33  ;;  %v1077_v59 = vmul.f32 0.7978846, %v1013_v3  ;;  %v1079_v35 = vmul.f32 0.7978846, %v1015_v63 }
 0x1f2   :  { %v3040_v2 = vpop.eup %2261  ;;  %v1080_v12 = vmul.f32 0.7978846, %v1016_v20  ;;  %v1082_v57 = vmul.f32 0.7978846, %v1018_v1  ;;  %v1113_v36 = vmul.f32 0.5, %v2735_v54  ;;  %v1237_v62 = vadd.f32 1.0, %v2855_v0  ;;  %v3053_v54 = vpop.f32.mrf.mxu1 }
 0x1f3   :  { %2273 = vtanh.f32 %v1078_v50  ;;  %v1241_v56 = vadd.f32 1.0, %v2877_v24  ;;  %v1111_v61 = vmul.f32 0.5, %v2723_v39  ;;  %v1115_v15 = vmul.f32 0.5, %v2737_v55  ;;  %3363 = vst [vmem:[#allocation36_spill] sm:$0xff] %v3047_v21  ;;  %3364 = vst [vmem:[#allocation37_spill] sm:$0xff] %v3053_v54 }
 0x1f4   :  { %v3049_v17 = vpop.eup %2263  ;;  %2275 = vtanh.f32 %v1077_v59  ;;  %v1301_v33 = vmul.f32 %v1237_v62, %v1109_v10  ;;  %v1239_v3 = vadd.f32 1.0, %v2860_v8  ;;  %v1243_v63 = vadd.f32 1.0, %v2881_v30  ;;  %v3062_v59 = vpop.f32.mrf.mxu0 }
 0x1f5   :  { %v3055_v0 = vpop.eup %2265  ;;  %2277 = vtanh.f32 %v1079_v35  ;;  %v1305_v24 = vmul.f32 %v1241_v56, %v1113_v36  ;;  %v825_v39 = vmul.f32 0.044715, %v3031_v9  ;;  %v827_v55 = vmul.f32 0.044715, %v3036_v40 }
 0x1f6   :  { %2279 = vtanh.f32 %v1080_v12  ;;  %v1303_v20 = vmul.f32 %v1239_v3, %v1111_v61  ;;  %v1307_v1 = vmul.f32 %v1243_v63, %v1115_v15  ;;  %v1108_v50 = vmul.f32 0.5, %v2715_v6  ;;  %v3067_v12 = vpop.f32.mrf.mxu1 }
 0x1f7   :  { %2281 = vtanh.f32 %v1082_v57  ;;  %v1361_v10 = vpack.c.bf16 %v1305_v24, %v1301_v33  ;;  %v889_v8 = vmul.f32 %v825_v39, %v3031_v9  ;;  %v891_v30 = vmul.f32 %v827_v55, %v3036_v40 }
 0x1f8   :  { %v1363_v62 = vpack.c.bf16 %v1307_v1, %v1303_v20  ;;  %v1112_v35 = vmul.f32 0.5, %v2727_v49  ;;  %v1236_v36 = vadd.f32 1.0, %v2828_v58  ;;  %v1240_v56 = vadd.f32 1.0, %v2864_v44 }
 0x1f9   :  { %1684 = vmatprep.mubr.bf16.mxu0 %v1361_v10  ;;  %v953_v6 = vmul.f32 %v889_v8, %v3031_v9  ;;  %v955_v57 = vmul.f32 %v891_v30, %v3036_v40  ;;  %v1110_v15 = vmul.f32 0.5, %v2717_v29  ;;  %v1114_v61 = vmul.f32 0.5, %v2729_v11  ;;  %v3081_v29 = vpop.f32.mrf.mxu0 }
 0x1fa   :  { %1781 = vmatprep.mubr.bf16.mxu1 %v1363_v62  ;;  %v1300_v33 = vmul.f32 %v1236_v36, %v1108_v50  ;;  %v1304_v3 = vmul.f32 %v1240_v56, %v1112_v35  ;;  %v1238_v49 = vadd.f32 1.0, %v2840_v60  ;;  %v1242_v58 = vadd.f32 1.0, %v2869_v32  ;;  %v3084_v60 = vpop.f32.mrf.mxu1 }
 0x1fb   :  { %v3075_v63 = vpop.eup %2267  ;;  %v1017_v44 = vadd.f32 %v953_v6, %v3031_v9  ;;  %v1019_v24 = vadd.f32 %v955_v57, %v3036_v40  ;;  %v828_v39 = vmul.f32 0.044715, %v3047_v21  ;;  %v830_v55 = vmul.f32 0.044715, %v3053_v54  ;;  %3365 = vst [vmem:[#allocation38_spill] sm:$0xff] %v3084_v60 }
 0x1fc   :  { %v1360_v11 = vpack.c.bf16 %v1304_v3, %v1300_v33  ;;  %v1302_v20 = vmul.f32 %v1238_v49, %v1110_v15  ;;  %v1306_v1 = vmul.f32 %v1242_v58, %v1114_v61  ;;  %v829_v50 = vmul.f32 0.044715, %v3062_v59 }
 0x1fd   :  { %v3086_v32 = vpop.eup %2269  ;;  %v1081_v10 = vmul.f32 0.7978846, %v1017_v44  ;;  %v1083_v8 = vmul.f32 0.7978846, %v1019_v24  ;;  %v892_v30 = vmul.f32 %v828_v39, %v3047_v21  ;;  %v894_v62 = vmul.f32 %v830_v55, %v3053_v54 }
 0x1fe   :  { %v3090_v35 = vpop.eup %2271  ;;  %1685 = vmatmul.mubr.bf16.gmra.mxu0 %v1360_v11  ;;  %v1362_v36 = vpack.c.bf16 %v1306_v1, %v1302_v20  ;;  %v893_v56 = vmul.f32 %v829_v50, %v3062_v59  ;;  %v831_v6 = vmul.f32 0.044715, %v3067_v12  ;;  %v832_v57 = vmul.f32 0.044715, %v3081_v29 }
 0x1ff   :  { %2283 = vtanh.f32 %v1081_v10  ;;  %v956_v15 = vmul.f32 %v892_v30, %v3047_v21  ;;  %v958_v61 = vmul.f32 %v894_v62, %v3053_v54  ;;  %v834_v33 = vmul.f32 0.044715, %v3084_v60  ;;  %v3115_v62 = vpop.f32.mrf.mxu0 }
 0x200   :  { %v3098_v3 = vpop.eup %2273  ;;  %2285 = vtanh.f32 %v1083_v8  ;;  %1782 = vmatmul.mubr.bf16.gmra.mxu1 %v1362_v36  ;;  %v957_v49 = vmul.f32 %v893_v56, %v3062_v59  ;;  %v895_v58 = vmul.f32 %v831_v6, %v3067_v12  ;;  %v896_v44 = vmul.f32 %v832_v57, %v3081_v29 }
 0x201   :  { %v3103_v24 = vpop.eup %2275  ;;  %v1020_v39 = vadd.f32 %v956_v15, %v3047_v21  ;;  %v1022_v55 = vadd.f32 %v958_v61, %v3053_v54  ;;  %v898_v11 = vmul.f32 %v834_v33, %v3084_v60  ;;  %v1117_v20 = vmul.f32 0.5, %v2754_v18  ;;  %v3130_v21 = vpop.f32.mrf.mxu0 }
 0x202   :  { %v3109_v1 = vpop.eup %2277  ;;  %v1021_v50 = vadd.f32 %v957_v49, %v3062_v59  ;;  %v959_v10 = vmul.f32 %v895_v58, %v3067_v12  ;;  %v960_v8 = vmul.f32 %v896_v44, %v3081_v29  ;;  %v1121_v30 = vmul.f32 0.5, %v2774_v37  ;;  %v3126_v37 = vpop.f32.mrf.mxu1  ;;  %3366 = vst [vmem:[#allocation39_spill] sm:$0xff] %v3130_v21 }
 0x203   :  { %v3117_v36 = vpop.eup %2279  ;;  %v1084_v56 = vmul.f32 0.7978846, %v1020_v39  ;;  %v1086_v6 = vmul.f32 0.7978846, %v1022_v55  ;;  %v962_v57 = vmul.f32 %v898_v11, %v3084_v60  ;;  %v1245_v18 = vadd.f32 1.0, %v2918_v25 }
 0x204   :  { %v3121_v15 = vpop.eup %2281  ;;  %v1085_v61 = vmul.f32 0.7978846, %v1021_v50  ;;  %v1023_v33 = vadd.f32 %v959_v10, %v3067_v12  ;;  %v1024_v49 = vadd.f32 %v960_v8, %v3081_v29  ;;  %v1249_v58 = vadd.f32 1.0, %v2941_v13 }
 0x205   :  { %2287 = vtanh.f32 %v1084_v56  ;;  %v1026_v44 = vadd.f32 %v962_v57, %v3084_v60  ;;  %v1309_v39 = vmul.f32 %v1245_v18, %v1117_v20  ;;  %v1119_v55 = vmul.f32 0.5, %v2756_v22  ;;  %v3136_v57 = vpop.f32.mrf.mxu1 }
 0x206   :  { %2289 = vtanh.f32 %v1086_v6  ;;  %v1087_v11 = vmul.f32 0.7978846, %v1023_v33  ;;  %v1088_v25 = vmul.f32 0.7978846, %v1024_v49  ;;  %v1313_v54 = vmul.f32 %v1249_v58, %v1121_v30  ;;  %3367 = vst [vmem:[#allocation40_spill] sm:$0xff] %v3136_v57  ;;  %v3369_v49 = vld [vmem:[#allocation15_spill] sm:$0xff] }
 0x207   :  { %2291 = vtanh.f32 %v1085_v61  ;;  %v1090_v50 = vmul.f32 0.7978846, %v1026_v44  ;;  %v1123_v10 = vmul.f32 0.5, %v2776_v41  ;;  %v1247_v13 = vadd.f32 1.0, %v2922_v28 }
 0x208   :  { %2293 = vtanh.f32 %v1087_v11  ;;  %v1365_v8 = vpack.c.bf16 %v1313_v54, %v1309_v39  ;;  %v1251_v56 = vadd.f32 1.0, %v2946_v34  ;;  %v833_v20 = vmul.f32 0.044715, %v3115_v62  ;;  %v3142_v54 = vpop.f32.mrf.mxu0 }
 0x209   :  { %2295 = vtanh.f32 %v1088_v25  ;;  %v1311_v22 = vmul.f32 %v1247_v13, %v1119_v55  ;;  %v835_v30 = vmul.f32 0.044715, %v3126_v37  ;;  %v1116_v6 = vmul.f32 0.5, %v2745_v4  ;;  %3368 = vst [vmem:[#allocation41_spill] sm:$0xff] %v3142_v54  ;;  %v3370_v55 = vld [vmem:[#allocation16_spill] sm:$0xff] }
 0x20a   :  { %2297 = vtanh.f32 %v1090_v50  ;;  %1692 = vmatprep.mubr.bf16.mxu0 %v1365_v8  ;;  %v1315_v18 = vmul.f32 %v1251_v56, %v1123_v10  ;;  %v897_v41 = vmul.f32 %v833_v20, %v3115_v62  ;;  %v1120_v28 = vmul.f32 0.5, %v2764_v23  ;;  %v3371_v25 = vld [vmem:[#allocation28_spill] sm:$0xff]  ;;  %v3153_v23 = vpop.f32.mrf.mxu1 }
 0x20b   :  { %v899_v34 = vmul.f32 %v835_v30, %v3126_v37  ;;  %v1244_v61 = vadd.f32 1.0, %v2895_v52  ;;  %v1248_v33 = vadd.f32 1.0, %v2933_v46  ;;  %v1118_v58 = vmul.f32 0.5, %v3369_v49  ;;  %3372 = vst [vmem:[#allocation15_spill] sm:$0xff] %v3153_v23  ;;  %v3373_v46 = vld [vmem:[#allocation30_spill] sm:$0xff] }
 0x20c   :  { %v3148_v44 = vpop.eup %2283  ;;  %v1367_v4 = vpack.c.bf16 %v1315_v18, %v1311_v22  ;;  %v961_v39 = vmul.f32 %v897_v41, %v3115_v62  ;;  %v1122_v11 = vmul.f32 0.5, %v3370_v55  ;;  %v1246_v50 = vadd.f32 1.0, %v3371_v25  ;;  %v3162_v41 = vpop.f32.mrf.mxu0 }
 0x20d   :  { %v3155_v10 = vpop.eup %2285  ;;  %v963_v13 = vmul.f32 %v899_v34, %v3126_v37  ;;  %v1308_v52 = vmul.f32 %v1244_v61, %v1116_v6  ;;  %v1312_v8 = vmul.f32 %v1248_v33, %v1120_v28  ;;  %v1250_v56 = vadd.f32 1.0, %v3373_v46 }
 0x20e   :  { %1789 = vmatprep.mubr.bf16.mxu1 %v1367_v4  ;;  %v1025_v20 = vadd.f32 %v961_v39, %v3115_v62  ;;  %v1310_v22 = vmul.f32 %v1246_v50, %v1118_v58  ;;  %v836_v30 = vmul.f32 0.044715, %v3130_v21  ;;  %v838_v18 = vmul.f32 0.044715, %v3136_v57  ;;  %v3169_v58 = vpop.f32.mrf.mxu1 }
 0x20f   :  { %v1027_v49 = vadd.f32 %v963_v13, %v3126_v37  ;;  %v1364_v55 = vpack.c.bf16 %v1312_v8, %v1308_v52  ;;  %v1314_v25 = vmul.f32 %v1250_v56, %v1122_v11  ;;  %v837_v34 = vmul.f32 0.044715, %v3142_v54 }
 0x210   :  { %v1089_v6 = vmul.f32 0.7978846, %v1025_v20  ;;  %v900_v28 = vmul.f32 %v836_v30, %v3130_v21  ;;  %v902_v61 = vmul.f32 %v838_v18, %v3136_v57  ;;  %v839_v33 = vmul.f32 0.044715, %v3153_v23 }
 0x211   :  { %v1091_v4 = vmul.f32 0.7978846, %v1027_v49  ;;  %1693 = vmatmul.mubr.bf16.gmra.mxu0 %v1364_v55  ;;  %v1366_v39 = vpack.c.bf16 %v1314_v25, %v1310_v22  ;;  %v901_v50 = vmul.f32 %v837_v34, %v3142_v54  ;;  %v840_v13 = vmul.f32 0.044715, %v3162_v41  ;;  %v3375_v34 = vld [vmem:[#allocation19_spill] sm:$0xff] }
 0x212   :  { %v3173_v52 = vpop.eup %2287  ;;  %2299 = vtanh.f32 %v1089_v6  ;;  %v964_v11 = vmul.f32 %v900_v28, %v3130_v21  ;;  %v966_v8 = vmul.f32 %v902_v61, %v3136_v57  ;;  %v903_v46 = vmul.f32 %v839_v33, %v3153_v23 }
 0x213   :  { %v3178_v56 = vpop.eup %2289  ;;  %2301 = vtanh.f32 %v1091_v4  ;;  %1790 = vmatmul.mubr.bf16.gmra.mxu1 %v1366_v39  ;;  %v965_v20 = vmul.f32 %v901_v50, %v3142_v54  ;;  %v904_v22 = vmul.f32 %v840_v13, %v3162_v41  ;;  %v842_v30 = vmul.f32 0.044715, %v3169_v58  ;;  %v3376_v39 = vld [vmem:[#allocation23_spill] sm:$0xff] }
 0x214   :  { %3374 = vst [vmem:[#allocation16_spill] sm:$0xff] %v3178_v56  ;;  %v3183_v18 = vpop.eup %2291  ;;  %v1028_v49 = vadd.f32 %v964_v11, %v3130_v21  ;;  %v1030_v55 = vadd.f32 %v966_v8, %v3136_v57  ;;  %v967_v25 = vmul.f32 %v903_v46, %v3153_v23  ;;  %v1125_v6 = vmul.f32 0.5, %v3375_v34 }
 0x215   :  { %v3189_v28 = vpop.eup %2293  ;;  %v1029_v61 = vadd.f32 %v965_v20, %v3142_v54  ;;  %v968_v33 = vmul.f32 %v904_v22, %v3162_v41  ;;  %v906_v4 = vmul.f32 %v842_v30, %v3169_v58  ;;  %v1129_v50 = vmul.f32 0.5, %v3376_v39  ;;  %v3377_v54 = vld [vmem:[#allocation20_spill] sm:$0xff] }
 0x216   :  { %v3195_v13 = vpop.eup %2295  ;;  %v1092_v56 = vmul.f32 0.7978846, %v1028_v49  ;;  %v1094_v11 = vmul.f32 0.7978846, %v1030_v55  ;;  %v1031_v8 = vadd.f32 %v967_v25, %v3153_v23  ;;  %v1253_v46 = vadd.f32 1.0, %v2977_v14  ;;  %v3205_v49 = vpop.f32.mrf.mxu0 }
 0x217   :  { %v3199_v57 = vpop.eup %2297  ;;  %v1093_v34 = vmul.f32 0.7978846, %v1029_v61  ;;  %v1032_v21 = vadd.f32 %v968_v33, %v3162_v41  ;;  %v970_v20 = vmul.f32 %v906_v4, %v3169_v58  ;;  %v1257_v22 = vadd.f32 1.0, %v3003_v27  ;;  %v3208_v23 = vpop.f32.mrf.mxu1  ;;  %v3378_v61 = vld [vmem:[#allocation24_spill] sm:$0xff] }
 0x218   :  { %2303 = vtanh.f32 %v1092_v56  ;;  %v1095_v30 = vmul.f32 0.7978846, %v1031_v8  ;;  %v1317_v39 = vmul.f32 %v1253_v46, %v1125_v6  ;;  %v1127_v60 = vmul.f32 0.5, %v3377_v54  ;;  %v3379_v46 = vld [vmem:[#allocation17_spill] sm:$0xff] }
 0x219   :  { %2305 = vtanh.f32 %v1094_v11  ;;  %v1096_v55 = vmul.f32 0.7978846, %v1032_v21  ;;  %v1034_v14 = vadd.f32 %v970_v20, %v3169_v58  ;;  %v1321_v25 = vmul.f32 %v1257_v22, %v1129_v50  ;;  %v3380_v20 = vld [vmem:[#allocation21_spill] sm:$0xff] }
 0x21a   :  { %2307 = vtanh.f32 %v1093_v34  ;;  %v1131_v33 = vmul.f32 0.5, %v3378_v61  ;;  %v1255_v4 = vadd.f32 1.0, %v2980_v5  ;;  %v1259_v27 = vadd.f32 1.0, %v3009_v42  ;;  %v3382_v61 = vld [vmem:[#allocation18_spill] sm:$0xff] }
 0x21b   :  { %2309 = vtanh.f32 %v1095_v30  ;;  %v1369_v56 = vpack.c.bf16 %v1321_v25, %v1317_v39  ;;  %v841_v54 = vmul.f32 0.044715, %v3205_v49  ;;  %v3214_v6 = vmul.f32 0.7978846, %v1034_v14  ;;  %v3381_v30 = vld [vmem:[#allocation32_spill] sm:$0xff] }
 0x21c   :  { %v1319_v11 = vmul.f32 %v1255_v4, %v1127_v60  ;;  %v1323_v21 = vmul.f32 %v1259_v27, %v1131_v33  ;;  %v843_v8 = vmul.f32 0.044715, %v3208_v23  ;;  %2311 = vtanh.f32 %v1096_v55  ;;  %v3383_v33 = vld [vmem:[#allocation22_spill] sm:$0xff] }
 0x21d   :  { %1700 = vmatprep.mubr.bf16.mxu0 %v1369_v56  ;;  %v905_v50 = vmul.f32 %v841_v54, %v3205_v49  ;;  %v1124_v34 = vmul.f32 0.5, %v3379_v46  ;;  %v1128_v5 = vmul.f32 0.5, %v3380_v20  ;;  %v1252_v39 = vadd.f32 1.0, %v3381_v30 }
 0x21e   :  { %v1371_v22 = vpack.c.bf16 %v1323_v21, %v1319_v11  ;;  %v907_v42 = vmul.f32 %v843_v8, %v3208_v23  ;;  %v1256_v14 = vadd.f32 1.0, %v2993_v31  ;;  %v1126_v55 = vmul.f32 0.5, %v3382_v61 }
 0x21f   :  { %v3223_v25 = vpop.eup %2299  ;;  %v969_v60 = vmul.f32 %v905_v50, %v3205_v49  ;;  %v1130_v4 = vmul.f32 0.5, %v3383_v33  ;;  %v1254_v27 = vadd.f32 1.0, %v2966_v38  ;;  %v1316_v11 = vmul.f32 %v1252_v39, %v1124_v34  ;;  %v3384_v34 = vld [vmem:[#allocation27_spill] sm:$0xff] }
 0x220   :  { %v3229_v56 = vpop.eup %2301  ;;  %1797 = vmatprep.mubr.bf16.mxu1 %v1371_v22  ;;  %v971_v54 = vmul.f32 %v907_v42, %v3208_v23  ;;  %v1320_v21 = vmul.f32 %v1256_v14, %v1128_v5  ;;  %v1258_v8 = vadd.f32 1.0, %v2997_v53  ;;  %v1133_v50 = vmul.f32 0.5, %v2891_v19 }
 0x221   :  { %v1033_v31 = vadd.f32 %v969_v60, %v3205_v49  ;;  %v1318_v46 = vmul.f32 %v1254_v27, %v1126_v55  ;;  %v1137_v20 = vmul.f32 0.5, %v2929_v43  ;;  %v1261_v33 = vadd.f32 1.0, %v3038_v16  ;;  %v3385_v16 = vld [vmem:[#allocation25_spill] sm:$0xff] }
 0x222   :  { %v1035_v30 = vadd.f32 %v971_v54, %v3208_v23  ;;  %v1368_v61 = vpack.c.bf16 %v1320_v21, %v1316_v11  ;;  %v1322_v38 = vmul.f32 %v1258_v8, %v1130_v4  ;;  %v1265_v42 = vadd.f32 1.0, %v3075_v63  ;;  %v3386_v11 = vld [vmem:[#allocation35_spill] sm:$0xff] }
 0x223   :  { %v1097_v22 = vmul.f32 0.7978846, %v1033_v31  ;;  %v1135_v5 = vmul.f32 0.5, %v3384_v34  ;;  %v1139_v53 = vmul.f32 0.5, %v2931_v7  ;;  %v1325_v60 = vmul.f32 %v1261_v33, %v1133_v50  ;;  %v3387_v50 = vld [vmem:[#allocation26_spill] sm:$0xff] }
 0x224   :  { %v1099_v39 = vmul.f32 0.7978846, %v1035_v30  ;;  %1701 = vmatmul.mubr.bf16.gmra.mxu0 %v1368_v61  ;;  %v1370_v14 = vpack.c.bf16 %v1322_v38, %v1318_v46  ;;  %v1263_v19 = vadd.f32 1.0, %v3040_v2  ;;  %v1329_v55 = vmul.f32 %v1265_v42, %v1137_v20  ;;  %v3388_v61 = vld [vmem:[#allocation29_spill] sm:$0xff] }
 0x225   :  { %v3242_v43 = vpop.eup %2303  ;;  %2313 = vtanh.f32 %v1097_v22  ;;  %v1267_v4 = vadd.f32 1.0, %v3086_v32  ;;  %v1132_v27 = vmul.f32 0.5, %v3385_v16  ;;  %v1136_v7 = vmul.f32 0.5, %v2911_v48 }
 0x226   :  { %v3246_v54 = vpop.eup %2305  ;;  %2315 = vtanh.f32 %v1099_v39  ;;  %1798 = vmatmul.mubr.bf16.gmra.mxu1 %v1370_v14  ;;  %v1327_v63 = vmul.f32 %v1263_v19, %v1135_v5  ;;  %v1260_v21 = vadd.f32 1.0, %v3386_v11  ;;  %v1373_v2 = vpack.c.bf16 %v1329_v55, %v1325_v60  ;;  %v3390_v11 = vld [vmem:[#allocation31_spill] sm:$0xff] }
 0x227   :  { %v3250_v8 = vpop.eup %2307  ;;  %v1331_v31 = vmul.f32 %v1267_v4, %v1139_v53  ;;  %v1264_v46 = vadd.f32 1.0, %v3049_v17  ;;  %v1134_v20 = vmul.f32 0.5, %v3387_v50  ;;  %v1138_v38 = vmul.f32 0.5, %v3388_v61 }
 0x228   :  { %v3254_v32 = vpop.eup %2309  ;;  %v1324_v30 = vmul.f32 %v1260_v21, %v1132_v27  ;;  %v1262_v33 = vadd.f32 1.0, %v3026_v26  ;;  %v1266_v22 = vadd.f32 1.0, %v3055_v0  ;;  %1708 = vmatprep.mubr.bf16.mxu0 %v1373_v2  ;;  %v1141_v34 = vmul.f32 0.5, %v2970_v47  ;;  %v3391_v2 = vld [vmem:[#allocation34_spill] sm:$0xff] }
 0x229   :  { %v1375_v48 = vpack.c.bf16 %v1331_v31, %v1327_v63  ;;  %v1328_v42 = vmul.f32 %v1264_v46, %v1136_v7  ;;  %v1145_v5 = vmul.f32 0.5, %v3031_v9  ;;  %v3261_v53 = vpop.eup %2311  ;;  %v1269_v14 = vadd.f32 1.0, %v3103_v24  ;;  %v3389_v7 = vld [vmem:[#allocation33_spill] sm:$0xff] }
 0x22a   :  { %v1326_v17 = vmul.f32 %v1262_v33, %v1134_v20  ;;  %v1330_v39 = vmul.f32 %v1266_v22, %v1138_v38  ;;  %v1273_v60 = vadd.f32 1.0, %v3148_v44  ;;  %v1143_v26 = vmul.f32 0.5, %v2972_v51 }
 0x22b   :  { %1805 = vmatprep.mubr.bf16.mxu1 %v1375_v48  ;;  %v1372_v19 = vpack.c.bf16 %v1328_v42, %v1324_v30  ;;  %v1147_v0 = vmul.f32 0.5, %v3036_v40  ;;  %v1271_v55 = vadd.f32 1.0, %v3109_v1  ;;  %v1333_v47 = vmul.f32 %v1269_v14, %v1141_v34 }
 0x22c   :  { %v1374_v4 = vpack.c.bf16 %v1330_v39, %v1326_v17  ;;  %v1337_v16 = vmul.f32 %v1273_v60, %v1145_v5  ;;  %v1275_v9 = vadd.f32 1.0, %v3155_v10  ;;  %2317 = vtanh.f32 %v3214_v6 }
 0x22d   :  { %1709 = vmatmul.mubr.bf16.gmra.mxu0 %v1372_v19  ;;  %v1335_v27 = vmul.f32 %v1271_v55, %v1143_v26  ;;  %v1140_v24 = vmul.f32 0.5, %v2951_v45  ;;  %v1268_v44 = vadd.f32 1.0, %v3090_v35  ;;  %v1144_v40 = vmul.f32 0.5, %v3389_v7  ;;  %v3393_v19 = vld [vmem:[#allocation38_spill] sm:$0xff] }
 0x22e   :  { %1806 = vmatmul.mubr.bf16.gmra.mxu1 %v1374_v4  ;;  %v1377_v63 = vpack.c.bf16 %v1337_v16, %v1333_v47  ;;  %v1339_v51 = vmul.f32 %v1275_v9, %v1147_v0  ;;  %v1272_v1 = vadd.f32 1.0, %v3117_v36  ;;  %v1142_v21 = vmul.f32 0.5, %v3390_v11  ;;  %v3394_v0 = vld [vmem:[#allocation16_spill] sm:$0xff]  ;;  %v3396_v16 = vld [vmem:[#allocation41_spill] sm:$0xff] }
 0x22f   :  { %v1146_v31 = vmul.f32 0.5, %v3391_v2  ;;  %v1270_v10 = vadd.f32 1.0, %v3098_v3  ;;  %v1274_v6 = vadd.f32 1.0, %v3121_v15  ;;  %v1332_v45 = vmul.f32 %v1268_v44, %v1140_v24 }
 0x230   :  { %1716 = vmatprep.mubr.bf16.mxu0 %v1377_v63  ;;  %v1379_v46 = vpack.c.bf16 %v1339_v51, %v1335_v27  ;;  %v1336_v50 = vmul.f32 %v1272_v1, %v1144_v40  ;;  %v1149_v35 = vmul.f32 0.5, %v3062_v59  ;;  %v1153_v30 = vmul.f32 0.5, %v3115_v62  ;;  %v3397_v51 = vld [vmem:[#allocation15_spill] sm:$0xff] }
 0x231   :  { %v1338_v20 = vmul.f32 %v1274_v6, %v1146_v31  ;;  %v1277_v61 = vadd.f32 1.0, %v3183_v18  ;;  %v1281_v36 = vadd.f32 1.0, %v3223_v25  ;;  %v1334_v22 = vmul.f32 %v1270_v10, %v1142_v21 }
 0x232   :  { %v2314_v38 = vpop.eup %2313  ;;  %1813 = vmatprep.mubr.bf16.mxu1 %v1379_v46  ;;  %v1376_v33 = vpack.c.bf16 %v1336_v50, %v1332_v45  ;;  %v1151_v3 = vmul.f32 0.5, %v3067_v12  ;;  %v1279_v15 = vadd.f32 1.0, %v3189_v28  ;;  %v1155_v59 = vmul.f32 0.5, %v3126_v37  ;;  %v3392_v28 = vld [vmem:[#allocation36_spill] sm:$0xff] }
 0x233   :  { %v2316_v48 = vpop.eup %2315  ;;  %v1341_v42 = vmul.f32 %v1277_v61, %v1149_v35  ;;  %v1345_v34 = vmul.f32 %v1281_v36, %v1153_v30  ;;  %v1283_v5 = vadd.f32 1.0, %v3229_v56  ;;  %v1378_v62 = vpack.c.bf16 %v1338_v20, %v1334_v22  ;;  %v3398_v30 = vld [vmem:[#allocation39_spill] sm:$0xff] }
 0x234   :  { %v1343_v17 = vmul.f32 %v1279_v15, %v1151_v3  ;;  %v1152_v18 = vmul.f32 0.5, %v3081_v29  ;;  %v1276_v14 = vadd.f32 1.0, %v3173_v52  ;;  %v1280_v12 = vadd.f32 1.0, %v3195_v13  ;;  %v3395_v29 = vld [vmem:[#allocation37_spill] sm:$0xff] }
 0x235   :  { %1717 = vmatmul.mubr.bf16.gmra.mxu0 %v1376_v33  ;;  %v1381_v25 = vpack.c.bf16 %v1345_v34, %v1341_v42  ;;  %v1347_v39 = vmul.f32 %v1283_v5, %v1155_v59  ;;  %v1148_v60 = vmul.f32 0.5, %v3392_v28  ;;  %v1154_v26 = vmul.f32 0.5, %v3393_v19 }
 0x236   :  { %1814 = vmatmul.mubr.bf16.gmra.mxu1 %v1378_v62  ;;  %v1278_v37 = vadd.f32 1.0, %v3394_v0  ;;  %v1282_v56 = vadd.f32 1.0, %v3199_v57  ;;  %v1344_v4 = vmul.f32 %v1280_v12, %v1152_v18  ;;  %v1150_v47 = vmul.f32 0.5, %v3395_v29 }
 0x237   :  { %1724 = vmatprep.mubr.bf16.mxu0 %v1381_v25  ;;  %v1383_v55 = vpack.c.bf16 %v1347_v39, %v1343_v17  ;;  %v1157_v9 = vmul.f32 0.5, %v3396_v16  ;;  %v1161_v52 = vmul.f32 0.5, %v3205_v49  ;;  %v1285_v13 = vadd.f32 1.0, %v3250_v8 }
 0x238   :  { %v1346_v27 = vmul.f32 %v1282_v56, %v1154_v26  ;;  %v1289_v24 = vadd.f32 1.0, %v2314_v38  ;;  %v1340_v44 = vmul.f32 %v1276_v14, %v1148_v60  ;;  %v1342_v63 = vmul.f32 %v1278_v37, %v1150_v47  ;;  %v3399_v38 = vld [vmem:[#allocation40_spill] sm:$0xff] }
 0x239   :  { %1821 = vmatprep.mubr.bf16.mxu1 %v1383_v55  ;;  %v1159_v7 = vmul.f32 0.5, %v3397_v51  ;;  %v1287_v57 = vadd.f32 1.0, %v3254_v32  ;;  %v2318_v40 = vpop.eup %2317  ;;  %v1349_v1 = vmul.f32 %v1285_v13, %v1157_v9  ;;  %v1163_v21 = vmul.f32 0.5, %v3208_v23 }
 0x23a   :  { %v1353_v11 = vmul.f32 %v1289_v24, %v1161_v52  ;;  %v1291_v2 = vadd.f32 1.0, %v2316_v48  ;;  %v1380_v31 = vpack.c.bf16 %v1344_v4, %v1340_v44  ;;  %v1382_v10 = vpack.c.bf16 %v1346_v27, %v1342_v63 }
 0x23b   :  { %v1351_v49 = vmul.f32 %v1287_v57, %v1159_v7  ;;  %v1288_v8 = vadd.f32 1.0, %v3261_v53  ;;  %v1160_v45 = vmul.f32 0.5, %v3162_v41  ;;  %v1284_v50 = vadd.f32 1.0, %v3242_v43 }
 0x23c   :  { %v1385_v6 = vpack.c.bf16 %v1353_v11, %v1349_v1  ;;  %v1355_v46 = vmul.f32 %v1291_v2, %v1163_v21  ;;  %v1290_v35 = vadd.f32 1.0, %v2318_v40  ;;  %v1162_v20 = vmul.f32 0.5, %v3169_v58 }
 0x23d   :  { %1725 = vmatmul.mubr.bf16.gmra.mxu0 %v1380_v31  ;;  %v1286_v23 = vadd.f32 1.0, %v3246_v54  ;;  %v1156_v61 = vmul.f32 0.5, %v3398_v30  ;;  %v1352_v36 = vmul.f32 %v1288_v8, %v1160_v45  ;;  %v1158_v33 = vmul.f32 0.5, %v3399_v38 }
 0x23e   :  { %1822 = vmatmul.mubr.bf16.gmra.mxu1 %v1382_v10  ;;  %1732 = vmatprep.mubr.bf16.mxu0 %v1385_v6  ;;  %v1387_v32 = vpack.c.bf16 %v1355_v46, %v1351_v49  ;;  %v1354_v53 = vmul.f32 %v1290_v35, %v1162_v20 }
 0x23f   :  { %v1348_v22 = vmul.f32 %v1284_v50, %v1156_v61  ;;  %v1350_v3 = vmul.f32 %v1286_v23, %v1158_v33 }
 0x240   :  { %1829 = vmatprep.mubr.bf16.mxu1 %v1387_v32 }
 0x241   :  { %v1384_v41 = vpack.c.bf16 %v1352_v36, %v1348_v22  ;;  %v1386_v15 = vpack.c.bf16 %v1354_v53, %v1350_v3 }
 0x245   :  { %1733 = vmatmul.mubr.bf16.gmra.mxu0 %v1384_v41 }
 0x246   :  { %1830 = vmatmul.mubr.bf16.gmra.mxu1 %v1386_v15 }
 0x2a9   :  { %v1955_v43 = vpop.f32.mrf.mxu0 }
 0x2ab   :  { %v2019_v48 = vpop.f32.mrf.mxu1  ;;  %v1956_v42 = vpop.f32.mrf.mxu0 }
 0x2ac   :  { %v1957_v34 = vadd.f32 %v1956_v42, %v1955_v43 }
 0x2ad   :  { %v2020_v58 = vpop.f32.mrf.mxu1  ;;  %v1958_v59 = vpop.f32.mrf.mxu0 }
 0x2ae   :  { %v2021_v54 = vadd.f32 %v2020_v58, %v2019_v48 }
 0x2af   :  { %v2022_v5 = vpop.f32.mrf.mxu1  ;;  %v1959_v62 = vpop.f32.mrf.mxu0 }
 0x2b0   :  { %v1776_v17 = vadd.f32 %v2021_v54, %v1957_v34  ;;  %v1960_v18 = vadd.f32 %v1959_v62, %v1958_v59 }
 0x2b1   :  { %v2023_v25 = vpop.f32.mrf.mxu1 }
 0x2b2   :  { %1838 = vst [vmem:[#allocation10] sm:$0xff] %v1776_v17  ;;  %v2024_v39 = vadd.f32 %v2023_v25, %v2022_v5 }
 0x2b4   :  { %v1779_v14 = vadd.f32 %v2024_v39, %v1960_v18 }
 0x2b6   :  { %1839 = vst [vmem:[#allocation10 + $0x8] sm:$0xff] %v1779_v14 }
 0x2be   :  { %v1961_v12 = vpop.f32.mrf.mxu0 }
 0x2c0   :  { %v2025_v28 = vpop.f32.mrf.mxu1  ;;  %v1962_v60 = vpop.f32.mrf.mxu0 }
 0x2c1   :  { %v1963_v19 = vadd.f32 %v1962_v60, %v1961_v12 }
 0x2c2   :  { %v2026_v26 = vpop.f32.mrf.mxu1  ;;  %v1964_v0 = vpop.f32.mrf.mxu0 }
 0x2c3   :  { %v2027_v37 = vadd.f32 %v2026_v26, %v2025_v28 }
 0x2c4   :  { %v2028_v56 = vpop.f32.mrf.mxu1  ;;  %v1965_v55 = vpop.f32.mrf.mxu0 }
 0x2c5   :  { %v1784_v4 = vadd.f32 %v2027_v37, %v1963_v19  ;;  %v1966_v29 = vadd.f32 %v1965_v55, %v1964_v0 }
 0x2c6   :  { %v2029_v47 = vpop.f32.mrf.mxu1 }
 0x2c7   :  { %1840 = vst [vmem:[#allocation10 + $0x10] sm:$0xff] %v1784_v4  ;;  %v2030_v16 = vadd.f32 %v2029_v47, %v2028_v56 }
 0x2c9   :  { %v1787_v9 = vadd.f32 %v2030_v16, %v1966_v29 }
 0x2cb   :  { %1841 = vst [vmem:[#allocation10 + $0x18] sm:$0xff] %v1787_v9 }
 0x2d1   :  { %v1967_v27 = vpop.f32.mrf.mxu0 }
 0x2d3   :  { %v2031_v52 = vpop.f32.mrf.mxu1  ;;  %v1968_v13 = vpop.f32.mrf.mxu0 }
 0x2d4   :  { %v1969_v24 = vadd.f32 %v1968_v13, %v1967_v27 }
 0x2d5   :  { %v2032_v44 = vpop.f32.mrf.mxu1  ;;  %v1970_v63 = vpop.f32.mrf.mxu0 }
 0x2d6   :  { %v2033_v51 = vadd.f32 %v2032_v44, %v2031_v52 }
 0x2d7   :  { %v2034_v7 = vpop.f32.mrf.mxu1  ;;  %v1971_v57 = vpop.f32.mrf.mxu0 }
 0x2d8   :  { %v1792_v40 = vadd.f32 %v2033_v51, %v1969_v24  ;;  %v1972_v1 = vadd.f32 %v1971_v57, %v1970_v63 }
 0x2d9   :  { %v2035_v11 = vpop.f32.mrf.mxu1 }
 0x2da   :  { %1842 = vst [vmem:[#allocation10 + $0x20] sm:$0xff] %v1792_v40  ;;  %v2036_v21 = vadd.f32 %v2035_v11, %v2034_v7 }
 0x2dc   :  { %v1795_v2 = vadd.f32 %v2036_v21, %v1972_v1 }
 0x2de   :  { %1843 = vst [vmem:[#allocation10 + $0x28] sm:$0xff] %v1795_v2 }
 0x2e4   :  { %v1973_v31 = vpop.f32.mrf.mxu0 }
 0x2e6   :  { %v2037_v10 = vpop.f32.mrf.mxu1  ;;  %v1974_v6 = vpop.f32.mrf.mxu0 }
 0x2e7   :  { %v1975_v49 = vadd.f32 %v1974_v6, %v1973_v31 }
 0x2e8   :  { %v2038_v46 = vpop.f32.mrf.mxu1  ;;  %v1976_v8 = vpop.f32.mrf.mxu0 }
 0x2e9   :  { %v2039_v45 = vadd.f32 %v2038_v46, %v2037_v10 }
 0x2ea   :  { %v2040_v50 = vpop.f32.mrf.mxu1  ;;  %v1977_v35 = vpop.f32.mrf.mxu0 }
 0x2eb   :  { %v1800_v32 = vadd.f32 %v2039_v45, %v1975_v49  ;;  %v1978_v20 = vadd.f32 %v1977_v35, %v1976_v8 }
 0x2ec   :  { %v2041_v23 = vpop.f32.mrf.mxu1 }
 0x2ed   :  { %1844 = vst [vmem:[#allocation10 + $0x30] sm:$0xff] %v1800_v32  ;;  %v2042_v30 = vadd.f32 %v2041_v23, %v2040_v50  ;;  %v1979_v61 = vpop.f32.mrf.mxu0 }
 0x2ee   :  { %v2043_v36 = vpop.f32.mrf.mxu1 }
 0x2ef   :  { %v1803_v38 = vadd.f32 %v2042_v30, %v1978_v20  ;;  %v1980_v33 = vpop.f32.mrf.mxu0 }
 0x2f0   :  { %v1981_v53 = vadd.f32 %v1980_v33, %v1979_v61  ;;  %v2044_v22 = vpop.f32.mrf.mxu1 }
 0x2f1   :  { %1845 = vst [vmem:[#allocation10 + $0x38] sm:$0xff] %v1803_v38  ;;  %v2045_v3 = vadd.f32 %v2044_v22, %v2043_v36  ;;  %v1982_v41 = vpop.f32.mrf.mxu0 }
 0x2f2   :  { %v2046_v15 = vpop.f32.mrf.mxu1 }
 0x2f3   :  { %v1808_v43 = vadd.f32 %v2045_v3, %v1981_v53  ;;  %v1983_v48 = vpop.f32.mrf.mxu0 }
 0x2f4   :  { %v1984_v42 = vadd.f32 %v1983_v48, %v1982_v41  ;;  %v2047_v34 = vpop.f32.mrf.mxu1 }
 0x2f5   :  { %1846 = vst [vmem:[#allocation10 + $0x40] sm:$0xff] %v1808_v43  ;;  %v2048_v58 = vadd.f32 %v2047_v34, %v2046_v15  ;;  %v1985_v59 = vpop.f32.mrf.mxu0 }
 0x2f6   :  { %v2049_v54 = vpop.f32.mrf.mxu1 }
 0x2f7   :  { %v1811_v5 = vadd.f32 %v2048_v58, %v1984_v42  ;;  %v1986_v62 = vpop.f32.mrf.mxu0 }
 0x2f8   :  { %v1987_v17 = vadd.f32 %v1986_v62, %v1985_v59  ;;  %v2050_v18 = vpop.f32.mrf.mxu1 }
 0x2f9   :  { %1847 = vst [vmem:[#allocation10 + $0x48] sm:$0xff] %v1811_v5  ;;  %v2051_v25 = vadd.f32 %v2050_v18, %v2049_v54  ;;  %v1988_v39 = vpop.f32.mrf.mxu0 }
 0x2fa   :  { %v2052_v14 = vpop.f32.mrf.mxu1 }
 0x2fb   :  { %v1816_v12 = vadd.f32 %v2051_v25, %v1987_v17  ;;  %v1989_v28 = vpop.f32.mrf.mxu0 }
 0x2fc   :  { %v1990_v60 = vadd.f32 %v1989_v28, %v1988_v39  ;;  %v2053_v19 = vpop.f32.mrf.mxu1 }
 0x2fd   :  { %1848 = vst [vmem:[#allocation10 + $0x50] sm:$0xff] %v1816_v12  ;;  %v2054_v26 = vadd.f32 %v2053_v19, %v2052_v14  ;;  %v1991_v0 = vpop.f32.mrf.mxu0 }
 0x2fe   :  { %v2055_v37 = vpop.f32.mrf.mxu1 }
 0x2ff   :  { %v1819_v56 = vadd.f32 %v2054_v26, %v1990_v60  ;;  %v1992_v55 = vpop.f32.mrf.mxu0 }
 0x300   :  { %v1993_v4 = vadd.f32 %v1992_v55, %v1991_v0  ;;  %v2056_v29 = vpop.f32.mrf.mxu1 }
 0x301   :  { %1849 = vst [vmem:[#allocation10 + $0x58] sm:$0xff] %v1819_v56  ;;  %v2057_v47 = vadd.f32 %v2056_v29, %v2055_v37  ;;  %v1994_v16 = vpop.f32.mrf.mxu0 }
 0x302   :  { %v2058_v9 = vpop.f32.mrf.mxu1 }
 0x303   :  { %v1824_v27 = vadd.f32 %v2057_v47, %v1993_v4  ;;  %v1995_v52 = vpop.f32.mrf.mxu0 }
 0x304   :  { %v1996_v13 = vadd.f32 %v1995_v52, %v1994_v16  ;;  %v2059_v24 = vpop.f32.mrf.mxu1 }
 0x305   :  { %1850 = vst [vmem:[#allocation10 + $0x60] sm:$0xff] %v1824_v27  ;;  %v2060_v44 = vadd.f32 %v2059_v24, %v2058_v9  ;;  %v1997_v63 = vpop.f32.mrf.mxu0 }
 0x306   :  { %v2061_v51 = vpop.f32.mrf.mxu1 }
 0x307   :  { %v1827_v7 = vadd.f32 %v2060_v44, %v1996_v13  ;;  %v1998_v57 = vpop.f32.mrf.mxu0 }
 0x308   :  { %v1999_v40 = vadd.f32 %v1998_v57, %v1997_v63  ;;  %v2062_v1 = vpop.f32.mrf.mxu1 }
 0x309   :  { %1851 = vst [vmem:[#allocation10 + $0x68] sm:$0xff] %v1827_v7  ;;  %v2063_v11 = vadd.f32 %v2062_v1, %v2061_v51  ;;  %v2000_v21 = vpop.f32.mrf.mxu0 }
 0x30a   :  { %v2064_v2 = vpop.f32.mrf.mxu1 }
 0x30b   :  { %v1832_v31 = vadd.f32 %v2063_v11, %v1999_v40  ;;  %v2001_v10 = vpop.f32.mrf.mxu0 }
 0x30c   :  { %v2002_v6 = vadd.f32 %v2001_v10, %v2000_v21  ;;  %v2065_v49 = vpop.f32.mrf.mxu1 }
 0x30d   :  { %1852 = vst [vmem:[#allocation10 + $0x70] sm:$0xff] %v1832_v31  ;;  %v2066_v46 = vadd.f32 %v2065_v49, %v2064_v2 }
 0x30f   :  { %v1835_v8 = vadd.f32 %v2066_v46, %v2002_v6 }
 0x311   :  { %1853 = vst [vmem:[#allocation10 + $0x78] sm:$0xff] %v1835_v8 }
 0x312   :  { %2410 = shalt.err (!%p2407_p10)
}
 0x313   :  { %1865 = dma.vmem_to_hbm [thread:$0]  %s1860_s3, 2048, %s3317_s4, [#allocation4], %s2429_s23, %s2429_s23, %s2430_s24  }
 0x314   :  { %2425 = dma.done.wait [#allocation4], 2048  }
 0x315   :  { %2426 = vsyncadd [#allocation4], 4294965248 }
 0x316   :  { %1869 = vsyncpa [#allocation3], 1 }
 0x317   :  { %1870 = vsyncpa [#allocation6], 1 }
 0x318   :  { %1871 = vsyncpa [#allocation9], 1 }
 0x319   :  { %1872 = vsyncpa [#allocation4], 1 }

</bundles_post_ra>
